<compile_context>
chip_gen: v5e
topology: v5e:2x2
jax: 0.10.0
libtpu: 0.0.40
codegen_flags: <defaults>
</compile_context>

<pallas_src>
import functools

import jax
import jax.numpy as jnp
from jax.experimental import pallas as pl
from jax.experimental.pallas import tpu as pltpu

# ---- model constants (PyTorch defaults: CNN(C=1, H=6, W=10, cnn_number_of_features=18)) ----
IC, IH, IW = 1, 6, 10               # input channels / taxel-image height / width
OC = 3                              # conv out channels
KH, KW = 3, 5                       # conv kernel size
CH, CW = IH - KH + 1, IW - KW + 1   # conv output spatial = (4, 6)
PH, PW = CH // 2, CW // 2           # max-pooled spatial = (2, 3)
NFEAT = OC * PH * PW                # 18 == cnn_number_of_features
NFEAT_PAD = 32                      # pooled features padded to a clean lane block
SUBLANE = 8


def cnn_encoder_kernel(x_ref, wconv_ref, base_ref, wih0_ref, b0_ref,
                       whh0_ref, wcat_ref, brest_ref, h_end_ref, mpidx_ref,
                       *, BP, T, L, HID):
    """Fused Conv2d(1->3,(3,5)) + MaxPool2d(2, return_indices) + L-layer LSTM.

    x_ref     : (N, IH*IW) f32, N = T*BP, row n = t*BP + b
    wconv_ref : (IH*IW, 4*NFEAT_PAD) f32 im2col conv matrix, lane layout
                col = q*NFEAT_PAD + (oc*PH*PW + ph*PW + pw), q = 2*dh + dw
    base_ref  : (1, NFEAT_PAD) i32 flat conv index of window corner (2ph*CW+2pw)
    wih0_ref  : (NFEAT_PAD, 4H) f32 layer-0 input weights (gate-permuted, row-padded)
    b0_ref    : (1, 4H) f32 layer-0 bias (conv bias folded in, gate-permuted)
    whh0_ref  : (HID, 4H) f32 layer-0 recurrent weights (gate-permuted)
    wcat_ref  : (max(L-1,1), 2*HID, 4H) f32 fused [W_ih.T; W_hh.T] for layers >= 1
    brest_ref : (max(L-1,1), 1, 4H) f32 biases for layers >= 1
    h_end_ref : (BP, HID) f32 out   -- h_n[-1] (padded batch rows are garbage)
    mpidx_ref : (BP, NFEAT_PAD) i32 out -- maxpool indices of the LAST frame
    """
    # ---------------- CNN: conv as a single im2col MXU matmul ----------------
    conv = jnp.dot(x_ref[...], wconv_ref[...],
                   preferred_element_type=jnp.float32)        # (N, 4*NFEAT_PAD)

    v0 = conv[:, 0 * NFEAT_PAD:1 * NFEAT_PAD]                 # window (0,0)
    v1 = conv[:, 1 * NFEAT_PAD:2 * NFEAT_PAD]                 # window (0,1)
    v2 = conv[:, 2 * NFEAT_PAD:3 * NFEAT_PAD]                 # window (1,0)
    v3 = conv[:, 3 * NFEAT_PAD:4 * NFEAT_PAD]                 # window (1,1)

    m01 = jnp.maximum(v0, v1)
    m23 = jnp.maximum(v2, v3)
    feats = jnp.maximum(m01, m23)                             # (N, NFEAT_PAD) pooled
    # (conv bias omitted on purpose: constant per channel => no effect on argmax,
    #  and its effect on the pooled values is folded into b0_ref in the wrapper.)

    # maxpool argmax indices, last frame only (all the module returns downstream)
    lo = (T - 1) * BP
    base = base_ref[...]                                      # (1, NFEAT_PAD) i32
    i01 = jnp.where(v0[lo:] >= v1[lo:], base, base + 1)
    i23 = jnp.where(v2[lo:] >= v3[lo:], base + CW, base + CW + 1)
    mpidx_ref[...] = jnp.where(m01[lo:] >= m23[lo:], i01, i23)

    # ---------------- LSTM (batch_first, num_layers=L) ----------------
    # Dropout between layers is a no-op in eval-mode forward.
    # layer-0 input projection for ALL timesteps at once (MXU), bias included.
    gx0 = jnp.dot(feats, wih0_ref[...],
                  preferred_element_type=jnp.float32) + b0_ref[...]   # (N, 4H)

    whh0 = whh0_ref[...]                                      # (HID, 4H)
    wcats = [wcat_ref[l - 1] for l in range(1, L)]            # (2H, 4H) each
    brest = [brest_ref[l - 1] for l in range(1, L)]           # (1, 4H) each

    h = [jnp.zeros((BP, HID), jnp.float32) for _ in range(L)]
    c = [jnp.zeros((BP, HID), jnp.float32) for _ in range(L)]

    def cell(gates, c_prev):
        # gate order is (i, f, o, g) -- columns permuted in the wrapper
        ifo = jax.nn.sigmoid(gates[:, :3 * HID])
        g = jnp.tanh(gates[:, 3 * HID:])
        i = ifo[:, :HID]
        f = ifo[:, HID:2 * HID]
        o = ifo[:, 2 * HID:]
        c_new = f * c_prev + i * g
        return o * jnp.tanh(c_new), c_new

    for t in range(T):                                        # small T: static unroll
        gates = gx0[t * BP:(t + 1) * BP, :] + jnp.dot(
            h[0], whh0, preferred_element_type=jnp.float32)
        h[0], c[0] = cell(gates, c[0])
        for l in range(1, L):
            hin = jnp.concatenate([h[l - 1], h[l]], axis=-1)  # (BP, 2H)
            gates = jnp.dot(hin, wcats[l - 1],
                            preferred_element_type=jnp.float32) + brest[l - 1]
            h[l], c[l] = cell(gates, c[l])

    h_end_ref[...] = h[L - 1]                                 # h_n[-1] (padded rows)


# ------------------------- wrapper-side weight packing -------------------------
def _permute_gates(a):
    """Reorder PyTorch LSTM gate blocks (i,f,g,o) -> (i,f,o,g) along the last axis."""
    h = a.shape[-1] // 4
    a4 = a.reshape(a.shape[:-1] + (4, h))
    a4 = a4[..., jnp.array([0, 1, 3, 2]), :]
    return a4.reshape(a.shape)


def _build_conv_matrix(conv_w):
    """Dense im2col conv matrix (IH*IW, 4*NFEAT_PAD); column layout matches kernel."""
    rows, cols, ocs, khs, kws = [], [], [], [], []
    for q in range(4):
        dh, dw = q // 2, q % 2
        for oc in range(OC):
            for ph in range(PH):
                for pw in range(PW):
                    col = q * NFEAT_PAD + oc * (PH * PW) + ph * PW + pw
                    oh, ow = 2 * ph + dh, 2 * pw + dw
                    for kh in range(KH):
                        for kw in range(KW):
                            rows.append((oh + kh) * IW + (ow + kw))
                            cols.append(col)
                            ocs.append(oc)
                            khs.append(kh)
                            kws.append(kw)
    vals = conv_w[jnp.array(ocs), 0, jnp.array(khs), jnp.array(kws)].astype(jnp.float32)
    w = jnp.zeros((IH * IW, 4 * NFEAT_PAD), jnp.float32)
    return w.at[jnp.array(rows), jnp.array(cols)].set(vals)


def cnn_encoder_forward(x, conv_w, conv_b, lstm_params):
    """x: (B, IH, IW, T) f32. Returns (h_end (B,HID), mp_indices (B,OC,PH,PW) int32)."""
    B, ih, iw, T = x.shape
    assert (ih, iw) == (IH, IW), "wrong taxel-image size"
    L = len(lstm_params)
    HID = lstm_params[0][1].shape[1]
    G = 4 * HID
    BP = ((B + SUBLANE - 1) // SUBLANE) * SUBLANE             # sublane-aligned batch
    N = T * BP

    # glue: frame-major, batch padded -- row n = t*BP + b (padded rows are zero)
    xt = jnp.transpose(x, (3, 0, 1, 2)).reshape(T, B, IH * IW).astype(jnp.float32)
    x2 = jnp.zeros((T, BP, IH * IW), jnp.float32).at[:, :B].set(xt).reshape(N, IH * IW)

    wconv = _build_conv_matrix(conv_w)

    base = []
    for j in range(NFEAT_PAD):
        if j < NFEAT:
            ph = (j % (PH * PW)) // PW
            pw = j % PW
            base.append(2 * ph * CW + 2 * pw)
        else:
            base.append(0)
    base_idx = jnp.array(base, jnp.int32).reshape(1, NFEAT_PAD)

    # layer 0: fold conv bias into the input bias, permute gates, pad K to 32
    w_ih0, w_hh0, b_ih0, b_hh0 = lstm_params[0]
    bias_feats = jnp.repeat(conv_b.astype(jnp.float32), PH * PW)          # (NFEAT,)
    b0_eff = _permute_gates(bias_feats @ w_ih0.T.astype(jnp.float32)
                            + b_ih0 + b_hh0).reshape(1, G)
    wih0 = jnp.zeros((NFEAT_PAD, G), jnp.float32).at[:NFEAT].set(
        _permute_gates(w_ih0.T.astype(jnp.float32)))
    whh0 = _permute_gates(w_hh0.T.astype(jnp.float32))                    # (HID, 4H)

    # layers >= 1: fused [W_ih.T; W_hh.T] and summed biases, gate-permuted
    if L > 1:
        wcat = jnp.stack([
            _permute_gates(jnp.concatenate(
                [p[0].T, p[1].T], axis=0).astype(jnp.float32))
            for p in lstm_params[1:]])                                    # (L-1, 2H, 4H)
        brest = jnp.stack([
            _permute_gates((p[2] + p[3]).astype(jnp.float32)).reshape(1, G)
            for p in lstm_params[1:]])                                    # (L-1, 1, 4H)
    else:
        wcat = jnp.zeros((1, 2 * HID, G), jnp.float32)                    # unused dummy
        brest = jnp.zeros((1, 1, G), jnp.float32)

    kernel = functools.partial(cnn_encoder_kernel, BP=BP, T=T, L=L, HID=HID)
    vmem = pl.BlockSpec(memory_space=pltpu.MemorySpace.VMEM)

    h_end, mpidx = pl.pallas_call(
        kernel,
        out_shape=(jax.ShapeDtypeStruct((BP, HID), jnp.float32),
                   jax.ShapeDtypeStruct((BP, NFEAT_PAD), jnp.int32)),
        in_specs=[vmem] * 8,
        out_specs=(vmem, vmem),
    )(x2, wconv, base_idx, wih0, b0_eff, whh0, wcat, brest)

    # PyTorch returns mp_indices of the LAST time step, shape (B, OC, PH, PW)
    mp_indices = mpidx[:B, :NFEAT].reshape(B, OC, PH, PW)
    return h_end[:B], mp_indices
    # TODO(synk): for very large T*B, tile the CNN / gx0 phase over N with a
    # ("parallel",) grid axis (2 TCs on v7x) and re-budget VMEM; unnecessary here.


# ------------------------- deterministic params -------------------------
def make_params(key, hidden_size, num_layers):
    ks = jax.random.split(key, 2 + 4 * num_layers)
    kc = (IC * KH * KW) ** -0.5
    kr = hidden_size ** -0.5
    conv_w = jax.random.uniform(ks[0], (OC, IC, KH, KW), jnp.float32, -kc, kc)
    conv_b = jax.random.uniform(ks[1], (OC,), jnp.float32, -kc, kc)
    lstm, i = [], 2
    for l in range(num_layers):
        in_size = NFEAT if l == 0 else hidden_size
        w_ih = jax.random.uniform(ks[i], (4 * hidden_size, in_size), jnp.float32, -kr, kr); i += 1
        w_hh = jax.random.uniform(ks[i], (4 * hidden_size, hidden_size), jnp.float32, -kr, kr); i += 1
        b_ih = jax.random.uniform(ks[i], (4 * hidden_size,), jnp.float32, -kr, kr); i += 1
        b_hh = jax.random.uniform(ks[i], (4 * hidden_size,), jnp.float32, -kr, kr); i += 1
        lstm.append((w_ih, w_hh, b_ih, b_hh))
    return conv_w, conv_b, lstm


# ------------------------- pure-JAX reference -------------------------
def reference_forward(x, conv_w, conv_b, lstm_params):
    B, _, _, T = x.shape
    HID = lstm_params[0][1].shape[1]
    L = len(lstm_params)
    feats, mp_last = [], None
    for t in range(T):
        frame = x[:, :, :, t]                                   # (B, IH, IW)
        chans = []
        for oc in range(OC):
            acc = jnp.zeros((B, CH, CW)) + conv_b[oc]
            for kh in range(KH):
                for kw in range(KW):
                    acc = acc + frame[:, kh:kh + CH, kw:kw + CW] * conv_w[oc, 0, kh, kw]
            chans.append(acc)
        conv = jnp.stack(chans, axis=1)                         # (B, OC, CH, CW)
        win = conv.reshape(B, OC, PH, 2, PW, 2).transpose(0, 1, 2, 4, 3, 5)
        win = win.reshape(B, OC, PH, PW, 4)
        pooled = win.max(-1)
        arg = win.argmax(-1)
        base = (jnp.arange(PH) * 2)[:, None] * CW + (jnp.arange(PW) * 2)[None, :]
        offs = jnp.array([0, 1, CW, CW + 1], jnp.int32)
        mp_last = base[None, None] + offs[arg]
        feats.append(pooled.reshape(B, NFEAT))
    seq = jnp.stack(feats, axis=1)                              # (B, T, NFEAT)
    h = [jnp.zeros((B, HID)) for _ in range(L)]
    c = [jnp.zeros((B, HID)) for _ in range(L)]
    for t in range(T):
        inp = seq[:, t]
        for l in range(L):
            w_ih, w_hh, b_ih, b_hh = lstm_params[l]
            gates = inp @ w_ih.T + h[l] @ w_hh.T + b_ih + b_hh
            i = jax.nn.sigmoid(gates[:, :HID])
            f = jax.nn.sigmoid(gates[:, HID:2 * HID])
            g = jnp.tanh(gates[:, 2 * HID:3 * HID])
            o = jax.nn.sigmoid(gates[:, 3 * HID:])
            c[l] = f * c[l] + i * g
            h[l] = o * jnp.tanh(c[l])
            inp = h[l]
    return h[-1], mp_last.astype(jnp.int32)


if __name__ == "__main__":
    B, T = 2, 8
    hidden_size, hidden_layer_depth = 32, 2
    key = jax.random.PRNGKey(0)
    kx, kp = jax.random.split(key)
    x = jax.random.normal(kx, (B, IH, IW, T), jnp.float32)
    conv_w, conv_b, lstm_params = make_params(kp, hidden_size, hidden_layer_depth)

    h_end, mp_indices = jax.block_until_ready(
        cnn_encoder_forward(x, conv_w, conv_b, lstm_params))

    h_ref, mp_ref = reference_forward(x, conv_w, conv_b, lstm_params)
    assert h_end.shape == (B, hidden_size)
    assert mp_indices.shape == (B, OC, PH, PW)
    assert jnp.allclose(h_end, h_ref, atol=2e-4, rtol=2e-4)
    assert jnp.array_equal(mp_indices, mp_ref)
    print("KERNEL_OK")
</pallas_src>

<mosaic_0001>
module attributes {stable_mosaic.version = 11 : i64} {
  func.func @cnn_encoder_kernel(%arg0: memref<64x60xf32, #tpu.memory_space<vmem>>, %arg1: memref<60x128xf32, #tpu.memory_space<vmem>>, %arg2: memref<1x32xi32, #tpu.memory_space<vmem>>, %arg3: memref<32x128xf32, #tpu.memory_space<vmem>>, %arg4: memref<1x128xf32, #tpu.memory_space<vmem>>, %arg5: memref<32x128xf32, #tpu.memory_space<vmem>>, %arg6: memref<1x64x128xf32, #tpu.memory_space<vmem>>, %arg7: memref<1x1x128xf32, #tpu.memory_space<vmem>>, %arg8: memref<8x32xf32, #tpu.memory_space<vmem>>, %arg9: memref<8x32xi32, #tpu.memory_space<vmem>>) attributes {dimension_semantics = [], scalar_prefetch = 0 : i64, scratch_operands = 0 : i64, tpu.core_type = #tpu.core_type<tc>} {
    %c0 = arith.constant 0 : index
    %c0_0 = arith.constant 0 : index
    %0 = vector.load %arg0[%c0, %c0_0] : memref<64x60xf32, #tpu.memory_space<vmem>>, vector<64x60xf32>
    %c0_1 = arith.constant 0 : index
    %c0_2 = arith.constant 0 : index
    %1 = vector.load %arg1[%c0_1, %c0_2] : memref<60x128xf32, #tpu.memory_space<vmem>>, vector<60x128xf32>
    %cst = arith.constant dense<0.000000e+00> : vector<64x128xf32>
    %2 = tpu.matmul %0, %1, %cst {dimension_numbers = #tpu.dot_dimension_numbers<[1], [0], [0], [1], [0, 0, 1, 1], [], []>} : vector<64x60xf32>, vector<60x128xf32>, vector<64x128xf32> -> vector<64x128xf32>
    %3 = vector.extract_strided_slice %2 {offsets = [0, 0], sizes = [64, 32], strides = [1, 1]} : vector<64x128xf32> to vector<64x32xf32>
    %4 = vector.extract_strided_slice %2 {offsets = [0, 32], sizes = [64, 32], strides = [1, 1]} : vector<64x128xf32> to vector<64x32xf32>
    %5 = vector.extract_strided_slice %2 {offsets = [0, 64], sizes = [64, 32], strides = [1, 1]} : vector<64x128xf32> to vector<64x32xf32>
    %6 = vector.extract_strided_slice %2 {offsets = [0, 96], sizes = [64, 32], strides = [1, 1]} : vector<64x128xf32> to vector<64x32xf32>
    %7 = arith.maximumf %3, %4 : vector<64x32xf32>
    %8 = arith.maximumf %5, %6 : vector<64x32xf32>
    %9 = arith.maximumf %7, %8 : vector<64x32xf32>
    %c0_3 = arith.constant 0 : index
    %c0_4 = arith.constant 0 : index
    %10 = vector.load %arg2[%c0_3, %c0_4] : memref<1x32xi32, #tpu.memory_space<vmem>>, vector<1x32xi32>
    %11 = vector.extract_strided_slice %3 {offsets = [56, 0], sizes = [8, 32], strides = [1, 1]} : vector<64x32xf32> to vector<8x32xf32>
    %12 = vector.extract_strided_slice %4 {offsets = [56, 0], sizes = [8, 32], strides = [1, 1]} : vector<64x32xf32> to vector<8x32xf32>
    %13 = arith.cmpf oge, %11, %12 : vector<8x32xf32>
    %c1_i32 = arith.constant 1 : i32
    %14 = vector.broadcast %c1_i32 : i32 to vector<1x32xi32>
    %15 = arith.addi %10, %14 : vector<1x32xi32>
    %16 = vector.shape_cast %10 : vector<1x32xi32> to vector<1x32xi32>
    %17 = vector.broadcast %16 : vector<1x32xi32> to vector<8x32xi32>
    %18 = vector.shape_cast %15 : vector<1x32xi32> to vector<1x32xi32>
    %19 = vector.broadcast %18 : vector<1x32xi32> to vector<8x32xi32>
    %20 = arith.select %13, %17, %19 : vector<8x32xi1>, vector<8x32xi32>
    %21 = vector.extract_strided_slice %5 {offsets = [56, 0], sizes = [8, 32], strides = [1, 1]} : vector<64x32xf32> to vector<8x32xf32>
    %22 = vector.extract_strided_slice %6 {offsets = [56, 0], sizes = [8, 32], strides = [1, 1]} : vector<64x32xf32> to vector<8x32xf32>
    %23 = arith.cmpf oge, %21, %22 : vector<8x32xf32>
    %c6_i32 = arith.constant 6 : i32
    %24 = vector.broadcast %c6_i32 : i32 to vector<1x32xi32>
    %25 = arith.addi %10, %24 : vector<1x32xi32>
    %c6_i32_5 = arith.constant 6 : i32
    %26 = vector.broadcast %c6_i32_5 : i32 to vector<1x32xi32>
    %27 = arith.addi %10, %26 : vector<1x32xi32>
    %c1_i32_6 = arith.constant 1 : i32
    %28 = vector.broadcast %c1_i32_6 : i32 to vector<1x32xi32>
    %29 = arith.addi %27, %28 : vector<1x32xi32>
    %30 = vector.shape_cast %25 : vector<1x32xi32> to vector<1x32xi32>
    %31 = vector.broadcast %30 : vector<1x32xi32> to vector<8x32xi32>
    %32 = vector.shape_cast %29 : vector<1x32xi32> to vector<1x32xi32>
    %33 = vector.broadcast %32 : vector<1x32xi32> to vector<8x32xi32>
    %34 = arith.select %23, %31, %33 : vector<8x32xi1>, vector<8x32xi32>
    %35 = vector.extract_strided_slice %7 {offsets = [56, 0], sizes = [8, 32], strides = [1, 1]} : vector<64x32xf32> to vector<8x32xf32>
    %36 = vector.extract_strided_slice %8 {offsets = [56, 0], sizes = [8, 32], strides = [1, 1]} : vector<64x32xf32> to vector<8x32xf32>
    %37 = arith.cmpf oge, %35, %36 : vector<8x32xf32>
    %38 = arith.select %37, %20, %34 : vector<8x32xi1>, vector<8x32xi32>
    %c0_7 = arith.constant 0 : index
    %c0_8 = arith.constant 0 : index
    %39 = vector.load %arg9[%c0_7, %c0_8] : memref<8x32xi32, #tpu.memory_space<vmem>>, vector<8x32xi32>
    tpu.vector_store %arg9[%c0_7, %c0_8], %38 {strides = array<i32>} : memref<8x32xi32, #tpu.memory_space<vmem>>, vector<8x32xi32>,
    %c0_9 = arith.constant 0 : index
    %c0_10 = arith.constant 0 : index
    %40 = vector.load %arg3[%c0_9, %c0_10] : memref<32x128xf32, #tpu.memory_space<vmem>>, vector<32x128xf32>
    %cst_11 = arith.constant dense<0.000000e+00> : vector<64x128xf32>
    %41 = tpu.matmul %9, %40, %cst_11 {dimension_numbers = #tpu.dot_dimension_numbers<[1], [0], [0], [1], [0, 0, 1, 1], [], []>} : vector<64x32xf32>, vector<32x128xf32>, vector<64x128xf32> -> vector<64x128xf32>
    %c0_12 = arith.constant 0 : index
    %c0_13 = arith.constant 0 : index
    %42 = vector.load %arg4[%c0_12, %c0_13] : memref<1x128xf32, #tpu.memory_space<vmem>>, vector<1x128xf32>
    %43 = vector.broadcast %42 : vector<1x128xf32> to vector<64x128xf32>
    %44 = arith.addf %41, %43 : vector<64x128xf32>
    %c0_14 = arith.constant 0 : index
    %c0_15 = arith.constant 0 : index
    %45 = vector.load %arg5[%c0_14, %c0_15] : memref<32x128xf32, #tpu.memory_space<vmem>>, vector<32x128xf32>
    %c0_16 = arith.constant 0 : index
    %c0_17 = arith.constant 0 : index
    %c0_18 = arith.constant 0 : index
    %46 = vector.load %arg6[%c0_16, %c0_17, %c0_18] : memref<1x64x128xf32, #tpu.memory_space<vmem>>, vector<1x64x128xf32>
    %47 = vector.shape_cast %46 : vector<1x64x128xf32> to vector<64x128xf32>
    %c0_19 = arith.constant 0 : index
    %c0_20 = arith.constant 0 : index
    %c0_21 = arith.constant 0 : index
    %48 = vector.load %arg7[%c0_19, %c0_20, %c0_21] : memref<1x1x128xf32, #tpu.memory_space<vmem>>, vector<1x1x128xf32>
    %49 = vector.shape_cast %48 : vector<1x1x128xf32> to vector<1x128xf32>
    %cst_22 = arith.constant 0.000000e+00 : f32
    %50 = vector.broadcast %cst_22 : f32 to vector<8x32xf32>
    %cst_23 = arith.constant 0.000000e+00 : f32
    %51 = vector.broadcast %cst_23 : f32 to vector<8x32xf32>
    %cst_24 = arith.constant 0.000000e+00 : f32
    %52 = vector.broadcast %cst_24 : f32 to vector<8x32xf32>
    %cst_25 = arith.constant 0.000000e+00 : f32
    %53 = vector.broadcast %cst_25 : f32 to vector<8x32xf32>
    %54 = vector.extract_strided_slice %44 {offsets = [0, 0], sizes = [8, 128], strides = [1, 1]} : vector<64x128xf32> to vector<8x128xf32>
    %cst_26 = arith.constant dense<0.000000e+00> : vector<8x128xf32>
    %55 = tpu.matmul %50, %45, %cst_26 {dimension_numbers = #tpu.dot_dimension_numbers<[1], [0], [0], [1], [0, 0, 1, 1], [], []>} : vector<8x32xf32>, vector<32x128xf32>, vector<8x128xf32> -> vector<8x128xf32>
    %56 = arith.addf %54, %55 : vector<8x128xf32>
    %57 = vector.extract_strided_slice %56 {offsets = [0, 0], sizes = [8, 96], strides = [1, 1]} : vector<8x128xf32> to vector<8x96xf32>
    %58 = arith.negf %57 : vector<8x96xf32>
    %59 = math.exp %58 : vector<8x96xf32>
    %cst_27 = arith.constant 1.000000e+00 : f32
    %60 = vector.broadcast %cst_27 : f32 to vector<8x96xf32>
    %61 = arith.addf %60, %59 : vector<8x96xf32>
    %62 = arith.divf %60, %61 : vector<8x96xf32>
    %63 = vector.extract_strided_slice %56 {offsets = [0, 96], sizes = [8, 32], strides = [1, 1]} : vector<8x128xf32> to vector<8x32xf32>
    %64 = math.tanh %63 : vector<8x32xf32>
    %65 = vector.extract_strided_slice %62 {offsets = [0, 0], sizes = [8, 32], strides = [1, 1]} : vector<8x96xf32> to vector<8x32xf32>
    %66 = vector.extract_strided_slice %62 {offsets = [0, 32], sizes = [8, 32], strides = [1, 1]} : vector<8x96xf32> to vector<8x32xf32>
    %67 = vector.extract_strided_slice %62 {offsets = [0, 64], sizes = [8, 32], strides = [1, 1]} : vector<8x96xf32> to vector<8x32xf32>
    %68 = arith.mulf %66, %52 : vector<8x32xf32>
    %69 = arith.mulf %65, %64 : vector<8x32xf32>
    %70 = arith.addf %68, %69 : vector<8x32xf32>
    %71 = math.tanh %70 : vector<8x32xf32>
    %72 = arith.mulf %67, %71 : vector<8x32xf32>
    %73 = tpu.concatenate %72, %51 in 1 : vector<8x32xf32>, vector<8x32xf32> -> vector<8x64xf32>
    %cst_28 = arith.constant dense<0.000000e+00> : vector<8x128xf32>
    %74 = tpu.matmul %73, %47, %cst_28 {dimension_numbers = #tpu.dot_dimension_numbers<[1], [0], [0], [1], [0, 0, 1, 1], [], []>} : vector<8x64xf32>, vector<64x128xf32>, vector<8x128xf32> -> vector<8x128xf32>
    %75 = vector.broadcast %49 : vector<1x128xf32> to vector<8x128xf32>
    %76 = arith.addf %74, %75 : vector<8x128xf32>
    %77 = vector.extract_strided_slice %76 {offsets = [0, 0], sizes = [8, 96], strides = [1, 1]} : vector<8x128xf32> to vector<8x96xf32>
    %78 = arith.negf %77 : vector<8x96xf32>
    %79 = math.exp %78 : vector<8x96xf32>
    %cst_29 = arith.constant 1.000000e+00 : f32
    %80 = vector.broadcast %cst_29 : f32 to vector<8x96xf32>
    %81 = arith.addf %80, %79 : vector<8x96xf32>
    %82 = arith.divf %80, %81 : vector<8x96xf32>
    %83 = vector.extract_strided_slice %76 {offsets = [0, 96], sizes = [8, 32], strides = [1, 1]} : vector<8x128xf32> to vector<8x32xf32>
    %84 = math.tanh %83 : vector<8x32xf32>
    %85 = vector.extract_strided_slice %82 {offsets = [0, 0], sizes = [8, 32], strides = [1, 1]} : vector<8x96xf32> to vector<8x32xf32>
    %86 = vector.extract_strided_slice %82 {offsets = [0, 32], sizes = [8, 32], strides = [1, 1]} : vector<8x96xf32> to vector<8x32xf32>
    %87 = vector.extract_strided_slice %82 {offsets = [0, 64], sizes = [8, 32], strides = [1, 1]} : vector<8x96xf32> to vector<8x32xf32>
    %88 = arith.mulf %86, %53 : vector<8x32xf32>
    %89 = arith.mulf %85, %84 : vector<8x32xf32>
    %90 = arith.addf %88, %89 : vector<8x32xf32>
    %91 = math.tanh %90 : vector<8x32xf32>
    %92 = arith.mulf %87, %91 : vector<8x32xf32>
    %93 = vector.extract_strided_slice %44 {offsets = [8, 0], sizes = [8, 128], strides = [1, 1]} : vector<64x128xf32> to vector<8x128xf32>
    %cst_30 = arith.constant dense<0.000000e+00> : vector<8x128xf32>
    %94 = tpu.matmul %72, %45, %cst_30 {dimension_numbers = #tpu.dot_dimension_numbers<[1], [0], [0], [1], [0, 0, 1, 1], [], []>} : vector<8x32xf32>, vector<32x128xf32>, vector<8x128xf32> -> vector<8x128xf32>
    %95 = arith.addf %93, %94 : vector<8x128xf32>
    %96 = vector.extract_strided_slice %95 {offsets = [0, 0], sizes = [8, 96], strides = [1, 1]} : vector<8x128xf32> to vector<8x96xf32>
    %97 = arith.negf %96 : vector<8x96xf32>
    %98 = math.exp %97 : vector<8x96xf32>
    %cst_31 = arith.constant 1.000000e+00 : f32
    %99 = vector.broadcast %cst_31 : f32 to vector<8x96xf32>
    %100 = arith.addf %99, %98 : vector<8x96xf32>
    %101 = arith.divf %99, %100 : vector<8x96xf32>
    %102 = vector.extract_strided_slice %95 {offsets = [0, 96], sizes = [8, 32], strides = [1, 1]} : vector<8x128xf32> to vector<8x32xf32>
    %103 = math.tanh %102 : vector<8x32xf32>
    %104 = vector.extract_strided_slice %101 {offsets = [0, 0], sizes = [8, 32], strides = [1, 1]} : vector<8x96xf32> to vector<8x32xf32>
    %105 = vector.extract_strided_slice %101 {offsets = [0, 32], sizes = [8, 32], strides = [1, 1]} : vector<8x96xf32> to vector<8x32xf32>
    %106 = vector.extract_strided_slice %101 {offsets = [0, 64], sizes = [8, 32], strides = [1, 1]} : vector<8x96xf32> to vector<8x32xf32>
    %107 = arith.mulf %105, %70 : vector<8x32xf32>
    %108 = arith.mulf %104, %103 : vector<8x32xf32>
    %109 = arith.addf %107, %108 : vector<8x32xf32>
    %110 = math.tanh %109 : vector<8x32xf32>
    %111 = arith.mulf %106, %110 : vector<8x32xf32>
    %112 = tpu.concatenate %111, %92 in 1 : vector<8x32xf32>, vector<8x32xf32> -> vector<8x64xf32>
    %cst_32 = arith.constant dense<0.000000e+00> : vector<8x128xf32>
    %113 = tpu.matmul %112, %47, %cst_32 {dimension_numbers = #tpu.dot_dimension_numbers<[1], [0], [0], [1], [0, 0, 1, 1], [], []>} : vector<8x64xf32>, vector<64x128xf32>, vector<8x128xf32> -> vector<8x128xf32>
    %114 = vector.broadcast %49 : vector<1x128xf32> to vector<8x128xf32>
    %115 = arith.addf %113, %114 : vector<8x128xf32>
    %116 = vector.extract_strided_slice %115 {offsets = [0, 0], sizes = [8, 96], strides = [1, 1]} : vector<8x128xf32> to vector<8x96xf32>
    %117 = arith.negf %116 : vector<8x96xf32>
    %118 = math.exp %117 : vector<8x96xf32>
    %cst_33 = arith.constant 1.000000e+00 : f32
    %119 = vector.broadcast %cst_33 : f32 to vector<8x96xf32>
    %120 = arith.addf %119, %118 : vector<8x96xf32>
    %121 = arith.divf %119, %120 : vector<8x96xf32>
    %122 = vector.extract_strided_slice %115 {offsets = [0, 96], sizes = [8, 32], strides = [1, 1]} : vector<8x128xf32> to vector<8x32xf32>
    %123 = math.tanh %122 : vector<8x32xf32>
    %124 = vector.extract_strided_slice %121 {offsets = [0, 0], sizes = [8, 32], strides = [1, 1]} : vector<8x96xf32> to vector<8x32xf32>
    %125 = vector.extract_strided_slice %121 {offsets = [0, 32], sizes = [8, 32], strides = [1, 1]} : vector<8x96xf32> to vector<8x32xf32>
    %126 = vector.extract_strided_slice %121 {offsets = [0, 64], sizes = [8, 32], strides = [1, 1]} : vector<8x96xf32> to vector<8x32xf32>
    %127 = arith.mulf %125, %90 : vector<8x32xf32>
    %128 = arith.mulf %124, %123 : vector<8x32xf32>
    %129 = arith.addf %127, %128 : vector<8x32xf32>
    %130 = math.tanh %129 : vector<8x32xf32>
    %131 = arith.mulf %126, %130 : vector<8x32xf32>
    %132 = vector.extract_strided_slice %44 {offsets = [16, 0], sizes = [8, 128], strides = [1, 1]} : vector<64x128xf32> to vector<8x128xf32>
    %cst_34 = arith.constant dense<0.000000e+00> : vector<8x128xf32>
    %133 = tpu.matmul %111, %45, %cst_34 {dimension_numbers = #tpu.dot_dimension_numbers<[1], [0], [0], [1], [0, 0, 1, 1], [], []>} : vector<8x32xf32>, vector<32x128xf32>, vector<8x128xf32> -> vector<8x128xf32>
    %134 = arith.addf %132, %133 : vector<8x128xf32>
    %135 = vector.extract_strided_slice %134 {offsets = [0, 0], sizes = [8, 96], strides = [1, 1]} : vector<8x128xf32> to vector<8x96xf32>
    %136 = arith.negf %135 : vector<8x96xf32>
    %137 = math.exp %136 : vector<8x96xf32>
    %cst_35 = arith.constant 1.000000e+00 : f32
    %138 = vector.broadcast %cst_35 : f32 to vector<8x96xf32>
    %139 = arith.addf %138, %137 : vector<8x96xf32>
    %140 = arith.divf %138, %139 : vector<8x96xf32>
    %141 = vector.extract_strided_slice %134 {offsets = [0, 96], sizes = [8, 32], strides = [1, 1]} : vector<8x128xf32> to vector<8x32xf32>
    %142 = math.tanh %141 : vector<8x32xf32>
    %143 = vector.extract_strided_slice %140 {offsets = [0, 0], sizes = [8, 32], strides = [1, 1]} : vector<8x96xf32> to vector<8x32xf32>
    %144 = vector.extract_strided_slice %140 {offsets = [0, 32], sizes = [8, 32], strides = [1, 1]} : vector<8x96xf32> to vector<8x32xf32>
    %145 = vector.extract_strided_slice %140 {offsets = [0, 64], sizes = [8, 32], strides = [1, 1]} : vector<8x96xf32> to vector<8x32xf32>
    %146 = arith.mulf %144, %109 : vector<8x32xf32>
    %147 = arith.mulf %143, %142 : vector<8x32xf32>
    %148 = arith.addf %146, %147 : vector<8x32xf32>
    %149 = math.tanh %148 : vector<8x32xf32>
    %150 = arith.mulf %145, %149 : vector<8x32xf32>
    %151 = tpu.concatenate %150, %131 in 1 : vector<8x32xf32>, vector<8x32xf32> -> vector<8x64xf32>
    %cst_36 = arith.constant dense<0.000000e+00> : vector<8x128xf32>
    %152 = tpu.matmul %151, %47, %cst_36 {dimension_numbers = #tpu.dot_dimension_numbers<[1], [0], [0], [1], [0, 0, 1, 1], [], []>} : vector<8x64xf32>, vector<64x128xf32>, vector<8x128xf32> -> vector<8x128xf32>
    %153 = vector.broadcast %49 : vector<1x128xf32> to vector<8x128xf32>
    %154 = arith.addf %152, %153 : vector<8x128xf32>
    %155 = vector.extract_strided_slice %154 {offsets = [0, 0], sizes = [8, 96], strides = [1, 1]} : vector<8x128xf32> to vector<8x96xf32>
    %156 = arith.negf %155 : vector<8x96xf32>
    %157 = math.exp %156 : vector<8x96xf32>
    %cst_37 = arith.constant 1.000000e+00 : f32
    %158 = vector.broadcast %cst_37 : f32 to vector<8x96xf32>
    %159 = arith.addf %158, %157 : vector<8x96xf32>
    %160 = arith.divf %158, %159 : vector<8x96xf32>
    %161 = vector.extract_strided_slice %154 {offsets = [0, 96], sizes = [8, 32], strides = [1, 1]} : vector<8x128xf32> to vector<8x32xf32>
    %162 = math.tanh %161 : vector<8x32xf32>
    %163 = vector.extract_strided_slice %160 {offsets = [0, 0], sizes = [8, 32], strides = [1, 1]} : vector<8x96xf32> to vector<8x32xf32>
    %164 = vector.extract_strided_slice %160 {offsets = [0, 32], sizes = [8, 32], strides = [1, 1]} : vector<8x96xf32> to vector<8x32xf32>
    %165 = vector.extract_strided_slice %160 {offsets = [0, 64], sizes = [8, 32], strides = [1, 1]} : vector<8x96xf32> to vector<8x32xf32>
    %166 = arith.mulf %164, %129 : vector<8x32xf32>
    %167 = arith.mulf %163, %162 : vector<8x32xf32>
    %168 = arith.addf %166, %167 : vector<8x32xf32>
    %169 = math.tanh %168 : vector<8x32xf32>
    %170 = arith.mulf %165, %169 : vector<8x32xf32>
    %171 = vector.extract_strided_slice %44 {offsets = [24, 0], sizes = [8, 128], strides = [1, 1]} : vector<64x128xf32> to vector<8x128xf32>
    %cst_38 = arith.constant dense<0.000000e+00> : vector<8x128xf32>
    %172 = tpu.matmul %150, %45, %cst_38 {dimension_numbers = #tpu.dot_dimension_numbers<[1], [0], [0], [1], [0, 0, 1, 1], [], []>} : vector<8x32xf32>, vector<32x128xf32>, vector<8x128xf32> -> vector<8x128xf32>
    %173 = arith.addf %171, %172 : vector<8x128xf32>
    %174 = vector.extract_strided_slice %173 {offsets = [0, 0], sizes = [8, 96], strides = [1, 1]} : vector<8x128xf32> to vector<8x96xf32>
    %175 = arith.negf %174 : vector<8x96xf32>
    %176 = math.exp %175 : vector<8x96xf32>
    %cst_39 = arith.constant 1.000000e+00 : f32
    %177 = vector.broadcast %cst_39 : f32 to vector<8x96xf32>
    %178 = arith.addf %177, %176 : vector<8x96xf32>
    %179 = arith.divf %177, %178 : vector<8x96xf32>
    %180 = vector.extract_strided_slice %173 {offsets = [0, 96], sizes = [8, 32], strides = [1, 1]} : vector<8x128xf32> to vector<8x32xf32>
    %181 = math.tanh %180 : vector<8x32xf32>
    %182 = vector.extract_strided_slice %179 {offsets = [0, 0], sizes = [8, 32], strides = [1, 1]} : vector<8x96xf32> to vector<8x32xf32>
    %183 = vector.extract_strided_slice %179 {offsets = [0, 32], sizes = [8, 32], strides = [1, 1]} : vector<8x96xf32> to vector<8x32xf32>
    %184 = vector.extract_strided_slice %179 {offsets = [0, 64], sizes = [8, 32], strides = [1, 1]} : vector<8x96xf32> to vector<8x32xf32>
    %185 = arith.mulf %183, %148 : vector<8x32xf32>
    %186 = arith.mulf %182, %181 : vector<8x32xf32>
    %187 = arith.addf %185, %186 : vector<8x32xf32>
    %188 = math.tanh %187 : vector<8x32xf32>
    %189 = arith.mulf %184, %188 : vector<8x32xf32>
    %190 = tpu.concatenate %189, %170 in 1 : vector<8x32xf32>, vector<8x32xf32> -> vector<8x64xf32>
    %cst_40 = arith.constant dense<0.000000e+00> : vector<8x128xf32>
    %191 = tpu.matmul %190, %47, %cst_40 {dimension_numbers = #tpu.dot_dimension_numbers<[1], [0], [0], [1], [0, 0, 1, 1], [], []>} : vector<8x64xf32>, vector<64x128xf32>, vector<8x128xf32> -> vector<8x128xf32>
    %192 = vector.broadcast %49 : vector<1x128xf32> to vector<8x128xf32>
    %193 = arith.addf %191, %192 : vector<8x128xf32>
    %194 = vector.extract_strided_slice %193 {offsets = [0, 0], sizes = [8, 96], strides = [1, 1]} : vector<8x128xf32> to vector<8x96xf32>
    %195 = arith.negf %194 : vector<8x96xf32>
    %196 = math.exp %195 : vector<8x96xf32>
    %cst_41 = arith.constant 1.000000e+00 : f32
    %197 = vector.broadcast %cst_41 : f32 to vector<8x96xf32>
    %198 = arith.addf %197, %196 : vector<8x96xf32>
    %199 = arith.divf %197, %198 : vector<8x96xf32>
    %200 = vector.extract_strided_slice %193 {offsets = [0, 96], sizes = [8, 32], strides = [1, 1]} : vector<8x128xf32> to vector<8x32xf32>
    %201 = math.tanh %200 : vector<8x32xf32>
    %202 = vector.extract_strided_slice %199 {offsets = [0, 0], sizes = [8, 32], strides = [1, 1]} : vector<8x96xf32> to vector<8x32xf32>
    %203 = vector.extract_strided_slice %199 {offsets = [0, 32], sizes = [8, 32], strides = [1, 1]} : vector<8x96xf32> to vector<8x32xf32>
    %204 = vector.extract_strided_slice %199 {offsets = [0, 64], sizes = [8, 32], strides = [1, 1]} : vector<8x96xf32> to vector<8x32xf32>
    %205 = arith.mulf %203, %168 : vector<8x32xf32>
    %206 = arith.mulf %202, %201 : vector<8x32xf32>
    %207 = arith.addf %205, %206 : vector<8x32xf32>
    %208 = math.tanh %207 : vector<8x32xf32>
    %209 = arith.mulf %204, %208 : vector<8x32xf32>
    %210 = vector.extract_strided_slice %44 {offsets = [32, 0], sizes = [8, 128], strides = [1, 1]} : vector<64x128xf32> to vector<8x128xf32>
    %cst_42 = arith.constant dense<0.000000e+00> : vector<8x128xf32>
    %211 = tpu.matmul %189, %45, %cst_42 {dimension_numbers = #tpu.dot_dimension_numbers<[1], [0], [0], [1], [0, 0, 1, 1], [], []>} : vector<8x32xf32>, vector<32x128xf32>, vector<8x128xf32> -> vector<8x128xf32>
    %212 = arith.addf %210, %211 : vector<8x128xf32>
    %213 = vector.extract_strided_slice %212 {offsets = [0, 0], sizes = [8, 96], strides = [1, 1]} : vector<8x128xf32> to vector<8x96xf32>
    %214 = arith.negf %213 : vector<8x96xf32>
    %215 = math.exp %214 : vector<8x96xf32>
    %cst_43 = arith.constant 1.000000e+00 : f32
    %216 = vector.broadcast %cst_43 : f32 to vector<8x96xf32>
    %217 = arith.addf %216, %215 : vector<8x96xf32>
    %218 = arith.divf %216, %217 : vector<8x96xf32>
    %219 = vector.extract_strided_slice %212 {offsets = [0, 96], sizes = [8, 32], strides = [1, 1]} : vector<8x128xf32> to vector<8x32xf32>
    %220 = math.tanh %219 : vector<8x32xf32>
    %221 = vector.extract_strided_slice %218 {offsets = [0, 0], sizes = [8, 32], strides = [1, 1]} : vector<8x96xf32> to vector<8x32xf32>
    %222 = vector.extract_strided_slice %218 {offsets = [0, 32], sizes = [8, 32], strides = [1, 1]} : vector<8x96xf32> to vector<8x32xf32>
    %223 = vector.extract_strided_slice %218 {offsets = [0, 64], sizes = [8, 32], strides = [1, 1]} : vector<8x96xf32> to vector<8x32xf32>
    %224 = arith.mulf %222, %187 : vector<8x32xf32>
    %225 = arith.mulf %221, %220 : vector<8x32xf32>
    %226 = arith.addf %224, %225 : vector<8x32xf32>
    %227 = math.tanh %226 : vector<8x32xf32>
    %228 = arith.mulf %223, %227 : vector<8x32xf32>
    %229 = tpu.concatenate %228, %209 in 1 : vector<8x32xf32>, vector<8x32xf32> -> vector<8x64xf32>
    %cst_44 = arith.constant dense<0.000000e+00> : vector<8x128xf32>
    %230 = tpu.matmul %229, %47, %cst_44 {dimension_numbers = #tpu.dot_dimension_numbers<[1], [0], [0], [1], [0, 0, 1, 1], [], []>} : vector<8x64xf32>, vector<64x128xf32>, vector<8x128xf32> -> vector<8x128xf32>
    %231 = vector.broadcast %49 : vector<1x128xf32> to vector<8x128xf32>
    %232 = arith.addf %230, %231 : vector<8x128xf32>
    %233 = vector.extract_strided_slice %232 {offsets = [0, 0], sizes = [8, 96], strides = [1, 1]} : vector<8x128xf32> to vector<8x96xf32>
    %234 = arith.negf %233 : vector<8x96xf32>
    %235 = math.exp %234 : vector<8x96xf32>
    %cst_45 = arith.constant 1.000000e+00 : f32
    %236 = vector.broadcast %cst_45 : f32 to vector<8x96xf32>
    %237 = arith.addf %236, %235 : vector<8x96xf32>
    %238 = arith.divf %236, %237 : vector<8x96xf32>
    %239 = vector.extract_strided_slice %232 {offsets = [0, 96], sizes = [8, 32], strides = [1, 1]} : vector<8x128xf32> to vector<8x32xf32>
    %240 = math.tanh %239 : vector<8x32xf32>
    %241 = vector.extract_strided_slice %238 {offsets = [0, 0], sizes = [8, 32], strides = [1, 1]} : vector<8x96xf32> to vector<8x32xf32>
    %242 = vector.extract_strided_slice %238 {offsets = [0, 32], sizes = [8, 32], strides = [1, 1]} : vector<8x96xf32> to vector<8x32xf32>
    %243 = vector.extract_strided_slice %238 {offsets = [0, 64], sizes = [8, 32], strides = [1, 1]} : vector<8x96xf32> to vector<8x32xf32>
    %244 = arith.mulf %242, %207 : vector<8x32xf32>
    %245 = arith.mulf %241, %240 : vector<8x32xf32>
    %246 = arith.addf %244, %245 : vector<8x32xf32>
    %247 = math.tanh %246 : vector<8x32xf32>
    %248 = arith.mulf %243, %247 : vector<8x32xf32>
    %249 = vector.extract_strided_slice %44 {offsets = [40, 0], sizes = [8, 128], strides = [1, 1]} : vector<64x128xf32> to vector<8x128xf32>
    %cst_46 = arith.constant dense<0.000000e+00> : vector<8x128xf32>
    %250 = tpu.matmul %228, %45, %cst_46 {dimension_numbers = #tpu.dot_dimension_numbers<[1], [0], [0], [1], [0, 0, 1, 1], [], []>} : vector<8x32xf32>, vector<32x128xf32>, vector<8x128xf32> -> vector<8x128xf32>
    %251 = arith.addf %249, %250 : vector<8x128xf32>
    %252 = vector.extract_strided_slice %251 {offsets = [0, 0], sizes = [8, 96], strides = [1, 1]} : vector<8x128xf32> to vector<8x96xf32>
    %253 = arith.negf %252 : vector<8x96xf32>
    %254 = math.exp %253 : vector<8x96xf32>
    %cst_47 = arith.constant 1.000000e+00 : f32
    %255 = vector.broadcast %cst_47 : f32 to vector<8x96xf32>
    %256 = arith.addf %255, %254 : vector<8x96xf32>
    %257 = arith.divf %255, %256 : vector<8x96xf32>
    %258 = vector.extract_strided_slice %251 {offsets = [0, 96], sizes = [8, 32], strides = [1, 1]} : vector<8x128xf32> to vector<8x32xf32>
    %259 = math.tanh %258 : vector<8x32xf32>
    %260 = vector.extract_strided_slice %257 {offsets = [0, 0], sizes = [8, 32], strides = [1, 1]} : vector<8x96xf32> to vector<8x32xf32>
    %261 = vector.extract_strided_slice %257 {offsets = [0, 32], sizes = [8, 32], strides = [1, 1]} : vector<8x96xf32> to vector<8x32xf32>
    %262 = vector.extract_strided_slice %257 {offsets = [0, 64], sizes = [8, 32], strides = [1, 1]} : vector<8x96xf32> to vector<8x32xf32>
    %263 = arith.mulf %261, %226 : vector<8x32xf32>
    %264 = arith.mulf %260, %259 : vector<8x32xf32>
    %265 = arith.addf %263, %264 : vector<8x32xf32>
    %266 = math.tanh %265 : vector<8x32xf32>
    %267 = arith.mulf %262, %266 : vector<8x32xf32>
    %268 = tpu.concatenate %267, %248 in 1 : vector<8x32xf32>, vector<8x32xf32> -> vector<8x64xf32>
    %cst_48 = arith.constant dense<0.000000e+00> : vector<8x128xf32>
    %269 = tpu.matmul %268, %47, %cst_48 {dimension_numbers = #tpu.dot_dimension_numbers<[1], [0], [0], [1], [0, 0, 1, 1], [], []>} : vector<8x64xf32>, vector<64x128xf32>, vector<8x128xf32> -> vector<8x128xf32>
    %270 = vector.broadcast %49 : vector<1x128xf32> to vector<8x128xf32>
    %271 = arith.addf %269, %270 : vector<8x128xf32>
    %272 = vector.extract_strided_slice %271 {offsets = [0, 0], sizes = [8, 96], strides = [1, 1]} : vector<8x128xf32> to vector<8x96xf32>
    %273 = arith.negf %272 : vector<8x96xf32>
    %274 = math.exp %273 : vector<8x96xf32>
    %cst_49 = arith.constant 1.000000e+00 : f32
    %275 = vector.broadcast %cst_49 : f32 to vector<8x96xf32>
    %276 = arith.addf %275, %274 : vector<8x96xf32>
    %277 = arith.divf %275, %276 : vector<8x96xf32>
    %278 = vector.extract_strided_slice %271 {offsets = [0, 96], sizes = [8, 32], strides = [1, 1]} : vector<8x128xf32> to vector<8x32xf32>
    %279 = math.tanh %278 : vector<8x32xf32>
    %280 = vector.extract_strided_slice %277 {offsets = [0, 0], sizes = [8, 32], strides = [1, 1]} : vector<8x96xf32> to vector<8x32xf32>
    %281 = vector.extract_strided_slice %277 {offsets = [0, 32], sizes = [8, 32], strides = [1, 1]} : vector<8x96xf32> to vector<8x32xf32>
    %282 = vector.extract_strided_slice %277 {offsets = [0, 64], sizes = [8, 32], strides = [1, 1]} : vector<8x96xf32> to vector<8x32xf32>
    %283 = arith.mulf %281, %246 : vector<8x32xf32>
    %284 = arith.mulf %280, %279 : vector<8x32xf32>
    %285 = arith.addf %283, %284 : vector<8x32xf32>
    %286 = math.tanh %285 : vector<8x32xf32>
    %287 = arith.mulf %282, %286 : vector<8x32xf32>
    %288 = vector.extract_strided_slice %44 {offsets = [48, 0], sizes = [8, 128], strides = [1, 1]} : vector<64x128xf32> to vector<8x128xf32>
    %cst_50 = arith.constant dense<0.000000e+00> : vector<8x128xf32>
    %289 = tpu.matmul %267, %45, %cst_50 {dimension_numbers = #tpu.dot_dimension_numbers<[1], [0], [0], [1], [0, 0, 1, 1], [], []>} : vector<8x32xf32>, vector<32x128xf32>, vector<8x128xf32> -> vector<8x128xf32>
    %290 = arith.addf %288, %289 : vector<8x128xf32>
    %291 = vector.extract_strided_slice %290 {offsets = [0, 0], sizes = [8, 96], strides = [1, 1]} : vector<8x128xf32> to vector<8x96xf32>
    %292 = arith.negf %291 : vector<8x96xf32>
    %293 = math.exp %292 : vector<8x96xf32>
    %cst_51 = arith.constant 1.000000e+00 : f32
    %294 = vector.broadcast %cst_51 : f32 to vector<8x96xf32>
    %295 = arith.addf %294, %293 : vector<8x96xf32>
    %296 = arith.divf %294, %295 : vector<8x96xf32>
    %297 = vector.extract_strided_slice %290 {offsets = [0, 96], sizes = [8, 32], strides = [1, 1]} : vector<8x128xf32> to vector<8x32xf32>
    %298 = math.tanh %297 : vector<8x32xf32>
    %299 = vector.extract_strided_slice %296 {offsets = [0, 0], sizes = [8, 32], strides = [1, 1]} : vector<8x96xf32> to vector<8x32xf32>
    %300 = vector.extract_strided_slice %296 {offsets = [0, 32], sizes = [8, 32], strides = [1, 1]} : vector<8x96xf32> to vector<8x32xf32>
    %301 = vector.extract_strided_slice %296 {offsets = [0, 64], sizes = [8, 32], strides = [1, 1]} : vector<8x96xf32> to vector<8x32xf32>
    %302 = arith.mulf %300, %265 : vector<8x32xf32>
    %303 = arith.mulf %299, %298 : vector<8x32xf32>
    %304 = arith.addf %302, %303 : vector<8x32xf32>
    %305 = math.tanh %304 : vector<8x32xf32>
    %306 = arith.mulf %301, %305 : vector<8x32xf32>
    %307 = tpu.concatenate %306, %287 in 1 : vector<8x32xf32>, vector<8x32xf32> -> vector<8x64xf32>
    %cst_52 = arith.constant dense<0.000000e+00> : vector<8x128xf32>
    %308 = tpu.matmul %307, %47, %cst_52 {dimension_numbers = #tpu.dot_dimension_numbers<[1], [0], [0], [1], [0, 0, 1, 1], [], []>} : vector<8x64xf32>, vector<64x128xf32>, vector<8x128xf32> -> vector<8x128xf32>
    %309 = vector.broadcast %49 : vector<1x128xf32> to vector<8x128xf32>
    %310 = arith.addf %308, %309 : vector<8x128xf32>
    %311 = vector.extract_strided_slice %310 {offsets = [0, 0], sizes = [8, 96], strides = [1, 1]} : vector<8x128xf32> to vector<8x96xf32>
    %312 = arith.negf %311 : vector<8x96xf32>
    %313 = math.exp %312 : vector<8x96xf32>
    %cst_53 = arith.constant 1.000000e+00 : f32
    %314 = vector.broadcast %cst_53 : f32 to vector<8x96xf32>
    %315 = arith.addf %314, %313 : vector<8x96xf32>
    %316 = arith.divf %314, %315 : vector<8x96xf32>
    %317 = vector.extract_strided_slice %310 {offsets = [0, 96], sizes = [8, 32], strides = [1, 1]} : vector<8x128xf32> to vector<8x32xf32>
    %318 = math.tanh %317 : vector<8x32xf32>
    %319 = vector.extract_strided_slice %316 {offsets = [0, 0], sizes = [8, 32], strides = [1, 1]} : vector<8x96xf32> to vector<8x32xf32>
    %320 = vector.extract_strided_slice %316 {offsets = [0, 32], sizes = [8, 32], strides = [1, 1]} : vector<8x96xf32> to vector<8x32xf32>
    %321 = vector.extract_strided_slice %316 {offsets = [0, 64], sizes = [8, 32], strides = [1, 1]} : vector<8x96xf32> to vector<8x32xf32>
    %322 = arith.mulf %320, %285 : vector<8x32xf32>
    %323 = arith.mulf %319, %318 : vector<8x32xf32>
    %324 = arith.addf %322, %323 : vector<8x32xf32>
    %325 = math.tanh %324 : vector<8x32xf32>
    %326 = arith.mulf %321, %325 : vector<8x32xf32>
    %327 = vector.extract_strided_slice %44 {offsets = [56, 0], sizes = [8, 128], strides = [1, 1]} : vector<64x128xf32> to vector<8x128xf32>
    %cst_54 = arith.constant dense<0.000000e+00> : vector<8x128xf32>
    %328 = tpu.matmul %306, %45, %cst_54 {dimension_numbers = #tpu.dot_dimension_numbers<[1], [0], [0], [1], [0, 0, 1, 1], [], []>} : vector<8x32xf32>, vector<32x128xf32>, vector<8x128xf32> -> vector<8x128xf32>
    %329 = arith.addf %327, %328 : vector<8x128xf32>
    %330 = vector.extract_strided_slice %329 {offsets = [0, 0], sizes = [8, 96], strides = [1, 1]} : vector<8x128xf32> to vector<8x96xf32>
    %331 = arith.negf %330 : vector<8x96xf32>
    %332 = math.exp %331 : vector<8x96xf32>
    %cst_55 = arith.constant 1.000000e+00 : f32
    %333 = vector.broadcast %cst_55 : f32 to vector<8x96xf32>
    %334 = arith.addf %333, %332 : vector<8x96xf32>
    %335 = arith.divf %333, %334 : vector<8x96xf32>
    %336 = vector.extract_strided_slice %329 {offsets = [0, 96], sizes = [8, 32], strides = [1, 1]} : vector<8x128xf32> to vector<8x32xf32>
    %337 = math.tanh %336 : vector<8x32xf32>
    %338 = vector.extract_strided_slice %335 {offsets = [0, 0], sizes = [8, 32], strides = [1, 1]} : vector<8x96xf32> to vector<8x32xf32>
    %339 = vector.extract_strided_slice %335 {offsets = [0, 32], sizes = [8, 32], strides = [1, 1]} : vector<8x96xf32> to vector<8x32xf32>
    %340 = vector.extract_strided_slice %335 {offsets = [0, 64], sizes = [8, 32], strides = [1, 1]} : vector<8x96xf32> to vector<8x32xf32>
    %341 = arith.mulf %339, %304 : vector<8x32xf32>
    %342 = arith.mulf %338, %337 : vector<8x32xf32>
    %343 = arith.addf %341, %342 : vector<8x32xf32>
    %344 = math.tanh %343 : vector<8x32xf32>
    %345 = arith.mulf %340, %344 : vector<8x32xf32>
    %346 = tpu.concatenate %345, %326 in 1 : vector<8x32xf32>, vector<8x32xf32> -> vector<8x64xf32>
    %cst_56 = arith.constant dense<0.000000e+00> : vector<8x128xf32>
    %347 = tpu.matmul %346, %47, %cst_56 {dimension_numbers = #tpu.dot_dimension_numbers<[1], [0], [0], [1], [0, 0, 1, 1], [], []>} : vector<8x64xf32>, vector<64x128xf32>, vector<8x128xf32> -> vector<8x128xf32>
    %348 = vector.broadcast %49 : vector<1x128xf32> to vector<8x128xf32>
    %349 = arith.addf %347, %348 : vector<8x128xf32>
    %350 = vector.extract_strided_slice %349 {offsets = [0, 0], sizes = [8, 96], strides = [1, 1]} : vector<8x128xf32> to vector<8x96xf32>
    %351 = arith.negf %350 : vector<8x96xf32>
    %352 = math.exp %351 : vector<8x96xf32>
    %cst_57 = arith.constant 1.000000e+00 : f32
    %353 = vector.broadcast %cst_57 : f32 to vector<8x96xf32>
    %354 = arith.addf %353, %352 : vector<8x96xf32>
    %355 = arith.divf %353, %354 : vector<8x96xf32>
    %356 = vector.extract_strided_slice %349 {offsets = [0, 96], sizes = [8, 32], strides = [1, 1]} : vector<8x128xf32> to vector<8x32xf32>
    %357 = math.tanh %356 : vector<8x32xf32>
    %358 = vector.extract_strided_slice %355 {offsets = [0, 0], sizes = [8, 32], strides = [1, 1]} : vector<8x96xf32> to vector<8x32xf32>
    %359 = vector.extract_strided_slice %355 {offsets = [0, 32], sizes = [8, 32], strides = [1, 1]} : vector<8x96xf32> to vector<8x32xf32>
    %360 = vector.extract_strided_slice %355 {offsets = [0, 64], sizes = [8, 32], strides = [1, 1]} : vector<8x96xf32> to vector<8x32xf32>
    %361 = arith.mulf %359, %324 : vector<8x32xf32>
    %362 = arith.mulf %358, %357 : vector<8x32xf32>
    %363 = arith.addf %361, %362 : vector<8x32xf32>
    %364 = math.tanh %363 : vector<8x32xf32>
    %365 = arith.mulf %360, %364 : vector<8x32xf32>
    %c0_58 = arith.constant 0 : index
    %c0_59 = arith.constant 0 : index
    %366 = vector.load %arg8[%c0_58, %c0_59] : memref<8x32xf32, #tpu.memory_space<vmem>>, vector<8x32xf32>
    tpu.vector_store %arg8[%c0_58, %c0_59], %365 {strides = array<i32>} : memref<8x32xf32, #tpu.memory_space<vmem>>, vector<8x32xf32>,
    return
  }
}

</mosaic_0001>

<bundles_post_ra>
// kernel: tpu_custom_call.1
= control target key start
LH: loop header
LB: loop body
LE: loop exit
PB: predicated region body
PF: predicated region fallthrough
CT: control target
= control target key end

     0   :  { %15 = vsyncpa [#allocation3], 0  ;;  %s2300_s0 = inlined_call_operand.hbm [shape: f32[64,60], index: 0, kind: input, shape index: {}]   ;;  %s2301_s1 = inlined_call_operand.hbm [shape: f32[60,128], index: 1, kind: input, shape index: {}]   ;;  %s2302_s2 = inlined_call_operand.vmem [shape: s32[1,32], index: 2, kind: input, shape index: {}]   ;;  %s2303_s3 = inlined_call_operand.hbm [shape: f32[32,128], index: 3, kind: input, shape index: {}]   ;;  %s2304_s4 = inlined_call_operand.vmem [shape: f32[1,128], index: 4, kind: input, shape index: {}]   ;;  %s2305_s5 = inlined_call_operand.hbm [shape: f32[32,128], index: 5, kind: input, shape index: {}]   ;;  %s2306_s6 = inlined_call_operand.hbm [shape: f32[1,64,128], index: 6, kind: input, shape index: {}]   ;;  %s2307_s7 = inlined_call_operand.vmem [shape: f32[1,1,128], index: 7, kind: input, shape index: {}]   ;;  %s2308_s8 = inlined_call_operand.hbm [shape: f32[8,32], index: 8, kind: output, shape index: {0}]   ;;  %s2309_s9 = inlined_call_operand.hbm [shape: s32[8,32], index: 9, kind: output, shape index: {1}]  }
   0x1   :  { %16 = vsyncpa [#allocation6], 0 }
   0x2   :  { %17 = vsyncpa [#allocation9], 0 }
   0x3   :  { %18 = vsyncpa [#allocation4], 0 }
   0x4   :  { %19 = vsyncpa [#allocation13], 0  ;;  %s37_s11 = sshll.u32 %s2301_s1, 4  ;;  %s1833_s12 = smov [#allocation5]   ;;  %s38_s11 = int_to_ptr.hbm [resolvable:$true] %s37_s11 }
   0x5   :  { %s39_s13 = sshll.u32 %s1833_s12, 4  ;;  %s67_s16 = sshll.u32 %s2305_s5, 4  ;;  %s40_s13 = int_to_ptr.vmem [resolvable:$true] %s39_s13  ;;  %s68_s16 = int_to_ptr.hbm [resolvable:$true] %s67_s16 }
   0x6   :  { %s1834_s17 = smov 128   ;;  %s1835_s18 = smov 8  }
   0x7   :  { %45 = dma.hbm_to_vmem [thread:$0]  %s38_s11, 1024, %s40_s13, [#allocation6], %s1834_s17, %s1834_s17, %s1835_s18  }
   0x8   :  { %s1836_s19 = smov [#allocation8]   ;;  %s24_s23 = sshll.u32 %s2300_s0, 4  ;;  %s25_s23 = int_to_ptr.hbm [resolvable:$true] %s24_s23 }
   0x9   :  { %s69_s20 = sshll.u32 %s1836_s19, 4  ;;  %s52_s25 = sshll.u32 %s2303_s3, 4  ;;  %s70_s20 = int_to_ptr.vmem [resolvable:$true] %s69_s20  ;;  %s53_s25 = int_to_ptr.hbm [resolvable:$true] %s52_s25 }
   0xa   :  { %75 = dma.hbm_to_vmem [thread:$0]  %s68_s16, 512, %s70_s20, [#allocation9], %s1834_s17, %s1834_s17, %s1835_s18  }
   0xb   :  { %s1837_s26 = smov [#allocation2]   ;;  %s1838_s5 = smov [#allocation7]  }
   0xc   :  { %s26_s27 = sshll.u32 %s1837_s26, 4  ;;  %s54_s28 = sshll.u32 %s1838_s5, 4  ;;  %s27_s27 = int_to_ptr.vmem [resolvable:$true] %s26_s27  ;;  %s55_s28 = int_to_ptr.vmem [resolvable:$true] %s54_s28 }
   0xd   :  { %32 = dma.hbm_to_vmem [thread:$0]  %s25_s23, 1024, %s27_s27, [#allocation3], %s1834_s17, %s1834_s17, %s1835_s18  }
   0xe   :  { %s80_s10 = sshll.u32 %s2306_s6, 4  ;;  %s1839_s0 = smov [#allocation10]   ;;  %s81_s10 = int_to_ptr.hbm [resolvable:$true] %s80_s10 }
   0xf   :  { %60 = dma.hbm_to_vmem [thread:$0]  %s53_s25, 512, %s55_s28, [#allocation6], %s1834_s17, %s1834_s17, %s1835_s18  }
  0x10   :  { %s82_s11 = sshll.u32 %s1839_s0, 4  ;;  %s83_s11 = int_to_ptr.vmem [resolvable:$true] %s82_s11 }
  0x11   :  { %88 = dma.hbm_to_vmem [thread:$0]  %s81_s10, 1024, %s83_s11, [#allocation9], %s1834_s17, %s1834_s17, %s1835_s18  }
  0x12   :  { %1823 = dma.done.wait [#allocation3], 1024  }
  0x13   :  { %1824 = vsyncadd [#allocation3], 4294966272 }
  0x14   :  { %1825 = dma.done.wait [#allocation6], 1536  }
  0x15   :  { %1826 = vsyncadd [#allocation6], 4294965760 }
  0x16   :  { %1827 = dma.done.wait [#allocation9], 1536  }
  0x17   :  { %1828 = vsyncadd [#allocation9], 4294965760  ;;  %vm152_vm0 = vcmask 1043456   ;;  %v126_v0 = vld [vmem:[#allocation5 + $0x38] sm:$0xf]  ;;  %v125_v1 = vld [vmem:[#allocation5 + $0x30] sm:$0xff] }
  0x18   :  { %1457 = vmatpush.msk.msra.mxu0 %vm152_vm0, %v126_v0  ;;  %v124_v2 = vld [vmem:[#allocation5 + $0x28] sm:$0xff]  ;;  %v123_v3 = vld [vmem:[#allocation5 + $0x20] sm:$0xff]  ;;  %v122_v4 = vld [vmem:[#allocation5 + $0x18] sm:$0xff]  ;;  %vm127_vm1 = vcmask 490496   ;;  %s1840_s3 = smov 96   ;;  %s1841_s6 = smov 64  }
  0x19   :  { %v121_v5 = vld [vmem:[#allocation5 + $0x10] sm:$0xff]  ;;  %v120_v6 = vld [vmem:[#allocation5 + $0x8] sm:$0xff]  ;;  %v119_v7 = vld [vmem:[#allocation5] sm:$0xff]  ;;  %vm296_vm2 = vcmask 261120   ;;  %v1842_v40 = vmov 0.0   ;;  %s1843_s14 = smov 32  }
  0x1a   :  { %165 = vmatpush.msra.mxu0 %v125_v1  ;;  %v111_v8 = vld [vmem:[#allocation2] sm:$0xff]  ;;  %v112_v9 = vld [vmem:[#allocation2 + $0x8] sm:$0xff]  ;;  %v113_v10 = vld [vmem:[#allocation2 + $0x10] sm:$0xff]  ;;  %vm453_vm7 = vcmask 523264   ;;  %s1844_s23 = smov [#allocation12]   ;;  %s1440_s26 = sshll.u32 %s2309_s9, 4  ;;  %s1441_s26 = int_to_ptr.hbm [resolvable:$true] %s1440_s26 }
  0x1b   :  { %v114_v11 = vld [vmem:[#allocation2 + $0x18] sm:$0xff]  ;;  %v115_v12 = vld [vmem:[#allocation2 + $0x20] sm:$0xff]  ;;  %v116_v13 = vld [vmem:[#allocation2 + $0x28] sm:$0xff]  ;;  %s1438_s1 = sshll.u32 %s1844_s23, 4  ;;  %s1429_s29 = sshll.u32 %s2308_s8, 4  ;;  %s1439_s1 = int_to_ptr.vmem [resolvable:$true] %s1438_s1  ;;  %s1430_s29 = int_to_ptr.hbm [resolvable:$true] %s1429_s29 }
  0x1c   :  { %166 = vmatpush.msra.mxu0 %v124_v2  ;;  %v117_v14 = vld [vmem:[#allocation2 + $0x30] sm:$0xff]  ;;  %v118_v15 = vld [vmem:[#allocation2 + $0x38] sm:$0xff]  ;;  %v299_v26 = vld [vmem:[#allocation7 + $0x8] sm:$0xff] }
  0x1d   :  { %v301_v24 = vld [vmem:[#allocation7 + $0x18] sm:$0xff]  ;;  %v300_v25 = vld [vmem:[#allocation7 + $0x10] sm:$0xff]  ;;  %v298_v31 = vld [vmem:[#allocation7] sm:$0xff] }
  0x1e   :  { %167 = vmatpush.msra.mxu0 %v123_v3  ;;  %1505 = vmatpush.msra.mxu2 %v301_v24  ;;  %v1947_v32 = vld [vmem:[#allocation8 + $0x18] sm:$0xff]  ;;  %v1949_v33 = vld [vmem:[#allocation8 + $0x10] sm:$0xff]  ;;  %v1952_v34 = vld [vmem:[#allocation8 + $0x8] sm:$0xff] }
  0x1f   :  { %342 = vmatpush.msra.mxu1 %v301_v24  ;;  %v1956_v35 = vld [vmem:[#allocation8] sm:$0xff] }
  0x20   :  { %168 = vmatpush.msra.mxu0 %v122_v4  ;;  %1506 = vmatpush.msra.mxu2 %v300_v25  ;;  %v1974_v43 = vld [vmem:[%s2304_s4] ss:$0 sm:$0xff] }
  0x21   :  { %343 = vmatpush.msra.mxu1 %v300_v25 }
  0x22   :  { %169 = vmatpush.msra.mxu0 %v121_v5  ;;  %1507 = vmatpush.msra.mxu2 %v299_v26  ;;  %v1985_v5 = vld [vmem:[#allocation10 + $0x38] sm:$0xff] }
  0x23   :  { %344 = vmatpush.msra.mxu1 %v299_v26  ;;  %465 = vmatpush.msra.mxu3 %v1985_v5  ;;  %v2065_v26 = vld [vmem:[%s2307_s7] ss:$0 sm:$0xff] }
  0x24   :  { %170 = vmatpush.msra.mxu0 %v120_v6  ;;  %1508 = vmatpush.msra.mxu2 %v298_v31  ;;  %v1987_v6 = vld [vmem:[#allocation10 + $0x30] sm:$0xff] }
  0x25   :  { %345 = vmatpush.msra.mxu1 %v298_v31  ;;  %466 = vmatpush.msra.mxu3 %v1987_v6 }
  0x26   :  { %171 = vmatpush.msra.mxu0 %v119_v7  ;;  %399 = vmatpush.msrb.mxu2 %v1947_v32  ;;  %v1991_v7 = vld [vmem:[#allocation10 + $0x28] sm:$0xff] }
  0x27   :  { %1458 = vmatmul.msk.f32.vlgmr.msra.gmra.mxu0 %vm127_vm1, %v111_v8  ;;  %1110 = vmatpush.msrb.mxu1 %v1985_v5  ;;  %v1997_v8 = vld [vmem:[#allocation10 + $0x20] sm:$0xff] }
  0x28   :  { %400 = vmatpush.msrb.mxu2 %v1949_v33  ;;  %1239 = vmatpush.msrb.mxu0 %v1985_v5 }
  0x29   :  { %1111 = vmatpush.msrb.mxu1 %v1987_v6  ;;  %467 = vmatpush.msra.mxu3 %v1991_v7 }
  0x2a   :  { %401 = vmatpush.msrb.mxu2 %v1952_v34  ;;  %1240 = vmatpush.msrb.mxu0 %v1987_v6 }
  0x2b   :  { %1112 = vmatpush.msrb.mxu1 %v1991_v7  ;;  %468 = vmatpush.msra.mxu3 %v1997_v8 }
  0x2c   :  { %402 = vmatpush.msrb.mxu2 %v1956_v35  ;;  %1241 = vmatpush.msrb.mxu0 %v1991_v7 }
  0x2d   :  { %1113 = vmatpush.msrb.mxu1 %v1997_v8 }
  0x2e   :  { %1242 = vmatpush.msrb.mxu0 %v1997_v8 }
  0x2f   :  { %1459 = vmatmul.msk.f32.gmra.mxu0 %vm127_vm1, %v112_v9  ;;  %v2003_v9 = vld [vmem:[#allocation10 + $0x18] sm:$0xff] }
  0x30   :  { %469 = vmatpush.msra.mxu3 %v2003_v9  ;;  %1114 = vmatpush.msrb.mxu1 %v2003_v9 }
  0x31   :  { %1243 = vmatpush.msrb.mxu0 %v2003_v9 }
  0x37   :  { %1460 = vmatmul.msk.f32.gmra.mxu0 %vm127_vm1, %v113_v10  ;;  %v2009_v10 = vld [vmem:[#allocation10 + $0x10] sm:$0xff] }
  0x38   :  { %470 = vmatpush.msra.mxu3 %v2009_v10  ;;  %1115 = vmatpush.msrb.mxu1 %v2009_v10 }
  0x39   :  { %1244 = vmatpush.msrb.mxu0 %v2009_v10 }
  0x3f   :  { %1461 = vmatmul.msk.f32.gmra.mxu0 %vm127_vm1, %v114_v11  ;;  %v2015_v11 = vld [vmem:[#allocation10 + $0x8] sm:$0xff] }
  0x40   :  { %471 = vmatpush.msra.mxu3 %v2015_v11  ;;  %1116 = vmatpush.msrb.mxu1 %v2015_v11 }
  0x41   :  { %1245 = vmatpush.msrb.mxu0 %v2015_v11 }
  0x47   :  { %1462 = vmatmul.msk.f32.gmra.mxu0 %vm127_vm1, %v115_v12 }
  0x4f   :  { %1463 = vmatmul.msk.f32.gmra.mxu0 %vm127_vm1, %v116_v13 }
  0x57   :  { %1464 = vmatmul.msk.f32.gmra.mxu0 %vm127_vm1, %v117_v14 }
  0x5f   :  { %1465 = vmatmul.msk.f32.gmra.mxu0 %vm127_vm1, %v118_v15 }
  0xa4   :  { %v173_v16 = vpop.f32.mrf.mxu0 }
  0xac   :  { %v1919_v17 = vpop.f32.mrf.mxu0 }
  0xb4   :  { %v1921_v18 = vpop.f32.mrf.mxu0 }
  0xbc   :  { %v1923_v19 = vpop.f32.mrf.mxu0 }
  0xc4   :  { %v1925_v20 = vpop.f32.mrf.mxu0 }
  0xcc   :  { %v1927_v21 = vpop.f32.mrf.mxu0 }
  0xd4   :  { %v1929_v22 = vpop.f32.mrf.mxu0 }
  0xdc   :  { %v1931_v23 = vpop.f32.mrf.mxu0 }
  0xdd   :  { %219 = vrot.lane.b32.xlu0 %v1931_v23, %s1840_s3 }
  0xe5   :  { %205 = vrot.lane.b32.xlu0 %v173_v16, %s1840_s3 }
 0x14f   :  { %v1936_v27 = vpop.permute.xlu0 %219 }
 0x150   :  { %v1940_v28 = vmax.f32 %v1931_v23, %v1936_v27 }
 0x152   :  { %259 = vrot.lane.b32.xlu1 %v1940_v28, %s1841_s6 }
 0x157   :  { %v206_v29 = vpop.permute.xlu0 %205 }
 0x158   :  { %v229_v30 = vmax.f32 %v173_v16, %v206_v29  ;;  %v2029_v16 = vld [vmem:[#allocation10] sm:$0xff] }
 0x159   :  { %472 = vmatpush.msra.mxu3 %v2029_v16  ;;  %1117 = vmatpush.msrb.mxu1 %v2029_v16 }
 0x15a   :  { %245 = vrot.lane.b32.xlu1 %v229_v30, %s1841_s6  ;;  %1246 = vmatpush.msrb.mxu0 %v2029_v16 }
 0x15b   :  { %657 = vmatpush.msrb.mxu3 %v1947_v32 }
 0x15d   :  { %658 = vmatpush.msrb.mxu3 %v1949_v33 }
 0x15f   :  { %659 = vmatpush.msrb.mxu3 %v1952_v34 }
 0x161   :  { %660 = vmatpush.msrb.mxu3 %v1956_v35 }
 0x162   :  { %207 = vrot.lane.b32.xlu1 %v1919_v17, %s1840_s3 }
 0x1c4   :  { %v1959_v36 = vpop.permute.xlu1 %259 }
 0x1c5   :  { %v276_v37 = vmax.f32 %v1940_v28, %v1959_v36 }
 0x1c7   :  { %1473 = vmatmul.msk.f32.vlgmr.msra.gmra.mxu2 %vm296_vm2, %v276_v37 }
 0x1c8   :  { %528 = vmatpush.msra.mxu2 %v1947_v32 }
 0x1ca   :  { %529 = vmatpush.msra.mxu2 %v1949_v33 }
 0x1cc   :  { %v246_v38 = vpop.permute.xlu1 %245  ;;  %530 = vmatpush.msra.mxu2 %v1952_v34 }
 0x1cd   :  { %v269_v39 = vmax.f32 %v229_v30, %v246_v38 }
 0x1ce   :  { %531 = vmatpush.msra.mxu2 %v1956_v35 }
 0x1cf   :  { %1466 = vmatmul.msk.f32.vlgmr.msra.gmra.mxu1 %vm296_vm2, %v269_v39  ;;  %403 = vmatmul.f32.vlgmr.msrb.gmra.mxu2 %v1842_v40 }
 0x1d0   :  { %594 = vmatpush.msrb.mxu2 %v1985_v5  ;;  %1368 = vmatpush.msra.mxu1 %v1985_v5 }
 0x1d2   :  { %595 = vmatpush.msrb.mxu2 %v1987_v6  ;;  %1369 = vmatpush.msra.mxu1 %v1987_v6 }
 0x1d4   :  { %v208_v3 = vpop.permute.xlu1 %207  ;;  %596 = vmatpush.msrb.mxu2 %v1991_v7  ;;  %1370 = vmatpush.msra.mxu1 %v1991_v7 }
 0x1d5   :  { %v230_v4 = vmax.f32 %v1919_v17, %v208_v3 }
 0x1d6   :  { %597 = vmatpush.msrb.mxu2 %v1997_v8  ;;  %1371 = vmatpush.msra.mxu1 %v1997_v8 }
 0x1d8   :  { %598 = vmatpush.msrb.mxu2 %v2003_v9  ;;  %1372 = vmatpush.msra.mxu1 %v2003_v9 }
 0x1da   :  { %599 = vmatpush.msrb.mxu2 %v2009_v10  ;;  %1373 = vmatpush.msra.mxu1 %v2009_v10 }
 0x1dc   :  { %600 = vmatpush.msrb.mxu2 %v2015_v11  ;;  %1374 = vmatpush.msra.mxu1 %v2015_v11 }
 0x1de   :  { %601 = vmatpush.msrb.mxu2 %v2029_v16  ;;  %1375 = vmatpush.msra.mxu1 %v2029_v16 }
 0x24a   :  { %v1969_v41 = vpop.f32.mrf.mxu2 }
 0x24c   :  { %v347_v42 = vpop.f32.mrf.mxu1 }
 0x24d   :  { %v348_v44 = vadd.f32 %v1974_v43, %v347_v42 }
 0x252   :  { %v404_v45 = vpop.f32.mrf.mxu2 }
 0x253   :  { %v407_v46 = vadd.f32 %v404_v45, %v348_v44 }
 0x255   :  { %1525 = vtanh.f32 %v407_v46  ;;  %v1474_v48 = vmul.f32 -1.442695, %v407_v46 }
 0x257   :  { %1527 = vpow2.f32 %v1474_v48 }
 0x25b   :  { %v1526_v47 = vpop.eup %1525 }
 0x25c   :  { %430 = vrot.lane.b32.xlu2 %v1526_v47, %s1843_s14 }
 0x25d   :  { %v1528_v49 = vpop.eup %1527 }
 0x25e   :  { %v411_v50 = vadd.f32 1.0, %v1528_v49 }
 0x260   :  { %1529 = vrcp.f32 %v411_v50  ;;  %v423_v56 = vand.u32 2147483648, %v411_v50  ;;  %vm417_vm4 = vweird.f32 %v411_v50  ;;  %v421_v57 = vand.u32 2147483647, %v411_v50 }
 0x262   :  { %v424_v59 = vor.u32 1.1754944e-38, %v423_v56  ;;  %vm422_vm6 = vcmp.eq.f32.partialorder %v421_v57, 8.507059e+37 }
 0x266   :  { %v1530_v51 = vpop.eup %1529 }
 0x267   :  { %v413_v52 = vmul.f32 %v1530_v51, %v411_v50  ;;  %vm418_vm3 = vweird.f32 %v1530_v51 }
 0x268   :  { %vm419_vm5 = vmor %vm417_vm4, %vm418_vm3 }
 0x269   :  { %v414_v53 = vsub.f32 1.0, %v413_v52 }
 0x26b   :  { %v415_v54 = vmul.f32 %v1530_v51, %v414_v53 }
 0x26d   :  { %v416_v55 = vadd.f32 %v1530_v51, %v415_v54 }
 0x26f   :  { %v420_v58 = vsel %vm419_vm5, %v1530_v51, %v416_v55 }
 0x270   :  { %v425_v61 = vsel %vm422_vm6, %v424_v59, %v420_v58 }
 0x271   :  { %v428_v63 = vmul.f32 0.0, %v425_v61 }
 0x2b6   :  { %v431_v60 = vpop.permute.xlu2 %430 }
 0x2b7   :  { %v433_v62 = vmul.f32 %v431_v60, %v425_v61 }
 0x2b9   :  { %435 = vrot.lane.b32.xlu2 %v433_v62, %s1843_s14 }
 0x313   :  { %v436_v0 = vpop.permute.xlu2 %435 }
 0x314   :  { %v1979_v1 = vadd.f32 %v436_v0, %v428_v63 }
 0x316   :  { %1531 = vtanh.f32 %v1979_v1 }
 0x31c   :  { %v1532_v2 = vpop.eup %1531 }
 0x31d   :  { %441 = vrot.lane.b32.xlu0 %v1532_v2, %s1843_s14 }
 0x325   :  { %247 = vrot.lane.b32.xlu0 %v230_v4, %s1841_s6 }
 0x38f   :  { %v442_v12 = vpop.permute.xlu0 %441 }
 0x390   :  { %v444_v13 = vmul.f32 %v442_v12, %v425_v61 }
 0x392   :  { %446 = vrot.lane.b32.xlu2 %v444_v13, %s1841_s6 }
 0x397   :  { %v248_v14 = vpop.permute.xlu0 %247 }
 0x398   :  { %v270_v15 = vmax.f32 %v230_v4, %v248_v14 }
 0x39a   :  { %1467 = vmatmul.msk.f32.gmra.mxu1 %vm296_vm2, %v270_v15 }
 0x3ec   :  { %v447_v17 = vpop.permute.xlu2 %446 }
 0x3ed   :  { %1477 = vmatmul.msk.f32.vlgmr.msra.gmra.mxu2 %vm296_vm2, %v447_v17  ;;  %v449_v24 = vsel %vm296_vm2, %v447_v17, 0.0 }
 0x3ee   :  { %1475 = vmatmul.msk.f32.vlgmr.msra.gmra.mxu3 %vm453_vm7, %v449_v24  ;;  %786 = vmatpush.msra.mxu2 %v1947_v32 }
 0x3ef   :  { %723 = vmatpush.msra.mxu3 %v1985_v5 }
 0x3f0   :  { %787 = vmatpush.msra.mxu2 %v1949_v33 }
 0x3f1   :  { %724 = vmatpush.msra.mxu3 %v1987_v6 }
 0x3f2   :  { %788 = vmatpush.msra.mxu2 %v1952_v34 }
 0x3f3   :  { %725 = vmatpush.msra.mxu3 %v1991_v7 }
 0x3f4   :  { %789 = vmatpush.msra.mxu2 %v1956_v35 }
 0x3f5   :  { %726 = vmatpush.msra.mxu3 %v1997_v8 }
 0x3f7   :  { %727 = vmatpush.msra.mxu3 %v2003_v9 }
 0x3f9   :  { %728 = vmatpush.msra.mxu3 %v2009_v10 }
 0x3fb   :  { %729 = vmatpush.msra.mxu3 %v2015_v11 }
 0x3fd   :  { %730 = vmatpush.msra.mxu3 %v2029_v16 }
 0x417   :  { %v350_v25 = vpop.f32.mrf.mxu1 }
 0x418   :  { %v351_v29 = vadd.f32 %v1974_v43, %v350_v25 }
 0x470   :  { %v533_v30 = vpop.f32.mrf.mxu2 }
 0x471   :  { %v536_v31 = vadd.f32 %v533_v30, %v351_v29  ;;  %v474_v37 = vpop.f32.mrf.mxu3 }
 0x472   :  { %v475_v38 = vadd.f32 %v2065_v26, %v474_v37 }
 0x473   :  { %1533 = vtanh.f32 %v536_v31  ;;  %v1478_v47 = vmul.f32 -1.442695, %v536_v31 }
 0x474   :  { %1535 = vtanh.f32 %v475_v38  ;;  %v1476_v42 = vmul.f32 -1.442695, %v475_v38 }
 0x476   :  { %1537 = vpow2.f32 %v1476_v42 }
 0x479   :  { %v1534_v39 = vpop.eup %1533 }
 0x47a   :  { %v1536_v40 = vpop.eup %1535  ;;  %559 = vrot.lane.b32.xlu1 %v1534_v39, %s1843_s14 }
 0x47b   :  { %499 = vrot.lane.b32.xlu2 %v1536_v40, %s1843_s14 }
 0x47c   :  { %v1538_v44 = vpop.eup %1537 }
 0x47d   :  { %v480_v45 = vadd.f32 1.0, %v1538_v44 }
 0x47f   :  { %1539 = vrcp.f32 %v480_v45  ;;  %v492_v54 = vand.u32 2147483648, %v480_v45  ;;  %vm486_vm9 = vweird.f32 %v480_v45  ;;  %v490_v55 = vand.u32 2147483647, %v480_v45 }
 0x480   :  { %1541 = vpow2.f32 %v1478_v47 }
 0x481   :  { %v493_v57 = vor.u32 1.1754944e-38, %v492_v54  ;;  %vm491_vm11 = vcmp.eq.f32.partialorder %v490_v55, 8.507059e+37 }
 0x485   :  { %v1540_v46 = vpop.eup %1539 }
 0x486   :  { %v482_v48 = vmul.f32 %v1540_v46, %v480_v45  ;;  %v1542_v50 = vpop.eup %1541  ;;  %vm487_vm8 = vweird.f32 %v1540_v46 }
 0x487   :  { %v540_v52 = vadd.f32 1.0, %v1542_v50  ;;  %vm488_vm10 = vmor %vm486_vm9, %vm487_vm8 }
 0x488   :  { %v483_v49 = vsub.f32 1.0, %v482_v48 }
 0x489   :  { %1543 = vrcp.f32 %v540_v52  ;;  %v552_v3 = vand.u32 2147483648, %v540_v52  ;;  %vm546_vm13 = vweird.f32 %v540_v52  ;;  %v550_v4 = vand.u32 2147483647, %v540_v52 }
 0x48a   :  { %v484_v51 = vmul.f32 %v1540_v46, %v483_v49 }
 0x48b   :  { %v553_v13 = vor.u32 1.1754944e-38, %v552_v3  ;;  %vm551_vm15 = vcmp.eq.f32.partialorder %v550_v4, 8.507059e+37 }
 0x48c   :  { %v485_v53 = vadd.f32 %v1540_v46, %v484_v51 }
 0x48e   :  { %v489_v56 = vsel %vm488_vm10, %v1540_v46, %v485_v53 }
 0x48f   :  { %v494_v59 = vsel %vm491_vm11, %v493_v57, %v489_v56  ;;  %v1544_v60 = vpop.eup %1543 }
 0x490   :  { %v542_v62 = vmul.f32 %v1544_v60, %v540_v52  ;;  %vm547_vm12 = vweird.f32 %v1544_v60  ;;  %v497_v24 = vmul.f32 0.0, %v494_v59 }
 0x491   :  { %vm548_vm14 = vmor %vm546_vm13, %vm547_vm12 }
 0x492   :  { %v543_v63 = vsub.f32 1.0, %v542_v62 }
 0x494   :  { %v544_v0 = vmul.f32 %v1544_v60, %v543_v63 }
 0x496   :  { %v545_v2 = vadd.f32 %v1544_v60, %v544_v0 }
 0x498   :  { %v549_v12 = vsel %vm548_vm14, %v1544_v60, %v545_v2 }
 0x499   :  { %v554_v15 = vsel %vm551_vm15, %v553_v13, %v549_v12 }
 0x49a   :  { %v557_v31 = vmul.f32 %v554_v15, %v1979_v1 }
 0x4d5   :  { %v500_v58 = vpop.permute.xlu2 %499 }
 0x4d6   :  { %v502_v61 = vmul.f32 %v500_v58, %v494_v59 }
 0x4d8   :  { %504 = vrot.lane.b32.xlu1 %v502_v61, %s1843_s14 }
 0x4ec   :  { %v560_v14 = vpop.permute.xlu1 %559 }
 0x4ed   :  { %v562_v17 = vmul.f32 %v560_v14, %v554_v15 }
 0x4ef   :  { %564 = vrot.lane.b32.xlu0 %v562_v17, %s1843_s14 }
 0x4f7   :  { %209 = vrot.lane.b32.xlu0 %v1921_v18, %s1840_s3 }
 0x54a   :  { %v505_v25 = vpop.permute.xlu1 %504 }
 0x54b   :  { %v2075_v29 = vadd.f32 %v505_v25, %v497_v24 }
 0x54d   :  { %1545 = vtanh.f32 %v2075_v29 }
 0x553   :  { %v1546_v30 = vpop.eup %1545 }
 0x554   :  { %510 = vrot.lane.b32.xlu1 %v1546_v30, %s1843_s14 }
 0x561   :  { %v565_v37 = vpop.permute.xlu0 %564 }
 0x562   :  { %v2080_v38 = vadd.f32 %v565_v37, %v557_v31 }
 0x564   :  { %1547 = vtanh.f32 %v2080_v38 }
 0x569   :  { %v210_v39 = vpop.permute.xlu0 %209 }
 0x56a   :  { %v1548_v40 = vpop.eup %1547  ;;  %v231_v42 = vmax.f32 %v1921_v18, %v210_v39 }
 0x56b   :  { %570 = vrot.lane.b32.xlu2 %v1548_v40, %s1843_s14 }
 0x56c   :  { %249 = vrot.lane.b32.xlu0 %v231_v42, %s1841_s6 }
 0x5c5   :  { %v571_v44 = vpop.permute.xlu2 %570 }
 0x5c6   :  { %v573_v45 = vmul.f32 %v571_v44, %v554_v15  ;;  %v511_v46 = vpop.permute.xlu1 %510 }
 0x5c7   :  { %v513_v47 = vmul.f32 %v511_v46, %v494_v59 }
 0x5c8   :  { %575 = vrot.lane.b32.xlu2 %v573_v45, %s1841_s6 }
 0x5c9   :  { %579 = vrot.lane.b32.xlu1 %v513_v47, %s1840_s3 }
 0x5de   :  { %v250_v1 = vpop.permute.xlu0 %249 }
 0x5df   :  { %v271_v48 = vmax.f32 %v231_v42, %v250_v1 }
 0x5e1   :  { %1468 = vmatmul.msk.f32.gmra.mxu1 %vm296_vm2, %v271_v48 }
 0x622   :  { %v576_v49 = vpop.permute.xlu2 %575 }
 0x623   :  { %1481 = vmatmul.msk.f32.vlgmr.msrb.gmra.mxu3 %vm296_vm2, %v576_v49 }
 0x624   :  { %915 = vmatpush.msrb.mxu3 %v1947_v32 }
 0x626   :  { %916 = vmatpush.msrb.mxu3 %v1949_v33 }
 0x628   :  { %917 = vmatpush.msrb.mxu3 %v1952_v34 }
 0x62a   :  { %918 = vmatpush.msrb.mxu3 %v1956_v35 }
 0x63b   :  { %v580_v18 = vpop.permute.xlu1 %579 }
 0x63c   :  { %v582_v50 = vsel %vm296_vm2, %v576_v49, %v580_v18 }
 0x63d   :  { %1479 = vmatmul.msk.f32.vlgmr.msrb.gmra.mxu2 %vm453_vm7, %v582_v50 }
 0x63e   :  { %852 = vmatpush.msrb.mxu2 %v1985_v5 }
 0x640   :  { %853 = vmatpush.msrb.mxu2 %v1987_v6 }
 0x642   :  { %854 = vmatpush.msrb.mxu2 %v1991_v7 }
 0x644   :  { %855 = vmatpush.msrb.mxu2 %v1997_v8 }
 0x646   :  { %856 = vmatpush.msrb.mxu2 %v2003_v9 }
 0x648   :  { %857 = vmatpush.msrb.mxu2 %v2009_v10 }
 0x64a   :  { %858 = vmatpush.msrb.mxu2 %v2015_v11 }
 0x64c   :  { %859 = vmatpush.msrb.mxu2 %v2029_v16 }
 0x65e   :  { %v353_v51 = vpop.f32.mrf.mxu1 }
 0x65f   :  { %v354_v52 = vadd.f32 %v1974_v43, %v353_v51 }
 0x6a6   :  { %v662_v53 = vpop.f32.mrf.mxu3 }
 0x6a7   :  { %v665_v54 = vadd.f32 %v662_v53, %v354_v52 }
 0x6a9   :  { %1549 = vtanh.f32 %v665_v54  ;;  %v1482_v59 = vmul.f32 -1.442695, %v665_v54 }
 0x6af   :  { %v1550_v55 = vpop.eup %1549 }
 0x6b0   :  { %688 = vrot.lane.b32.xlu2 %v1550_v55, %s1843_s14 }
 0x6c0   :  { %v603_v56 = vpop.f32.mrf.mxu2 }
 0x6c1   :  { %v604_v57 = vadd.f32 %v2065_v26, %v603_v56 }
 0x6c3   :  { %1551 = vtanh.f32 %v604_v57  ;;  %v1480_v25 = vmul.f32 -1.442695, %v604_v57 }
 0x6c4   :  { %1553 = vpow2.f32 %v1482_v59 }
 0x6c9   :  { %v1552_v58 = vpop.eup %1551 }
 0x6ca   :  { %628 = vrot.lane.b32.xlu0 %v1552_v58, %s1843_s14  ;;  %v1554_v60 = vpop.eup %1553 }
 0x6cb   :  { %v669_v61 = vadd.f32 1.0, %v1554_v60 }
 0x6cd   :  { %1555 = vrcp.f32 %v669_v61  ;;  %v681_v4 = vand.u32 2147483648, %v669_v61  ;;  %vm675_vm1 = vweird.f32 %v669_v61  ;;  %v679_v12 = vand.u32 2147483647, %v669_v61 }
 0x6ce   :  { %1557 = vpow2.f32 %v1480_v25 }
 0x6cf   :  { %v682_v14 = vor.u32 1.1754944e-38, %v681_v4  ;;  %vm680_vm4 = vcmp.eq.f32.partialorder %v679_v12, 8.507059e+37 }
 0x6d3   :  { %v1556_v62 = vpop.eup %1555 }
 0x6d4   :  { %v671_v63 = vmul.f32 %v1556_v62, %v669_v61  ;;  %vm676_vm0 = vweird.f32 %v1556_v62  ;;  %v1558_v30 = vpop.eup %1557 }
 0x6d5   :  { %vm677_vm3 = vmor %vm675_vm1, %vm676_vm0  ;;  %v609_v31 = vadd.f32 1.0, %v1558_v30 }
 0x6d6   :  { %v672_v0 = vsub.f32 1.0, %v671_v63 }
 0x6d7   :  { %1559 = vrcp.f32 %v609_v31  ;;  %v621_v45 = vand.u32 2147483648, %v609_v31  ;;  %vm615_vm6 = vweird.f32 %v609_v31  ;;  %v619_v46 = vand.u32 2147483647, %v609_v31 }
 0x6d8   :  { %v673_v2 = vmul.f32 %v1556_v62, %v672_v0 }
 0x6d9   :  { %v622_v1 = vor.u32 1.1754944e-38, %v621_v45  ;;  %vm620_vm9 = vcmp.eq.f32.partialorder %v619_v46, 8.507059e+37 }
 0x6da   :  { %v674_v3 = vadd.f32 %v1556_v62, %v673_v2 }
 0x6dc   :  { %v678_v13 = vsel %vm677_vm3, %v1556_v62, %v674_v3 }
 0x6dd   :  { %v683_v17 = vsel %vm680_vm4, %v682_v14, %v678_v13  ;;  %v1560_v37 = vpop.eup %1559 }
 0x6de   :  { %v611_v39 = vmul.f32 %v1560_v37, %v609_v31  ;;  %vm616_vm5 = vweird.f32 %v1560_v37  ;;  %v686_v50 = vmul.f32 %v683_v17, %v2080_v38 }
 0x6df   :  { %vm617_vm8 = vmor %vm615_vm6, %vm616_vm5 }
 0x6e0   :  { %v612_v40 = vsub.f32 1.0, %v611_v39 }
 0x6e2   :  { %v613_v42 = vmul.f32 %v1560_v37, %v612_v40 }
 0x6e4   :  { %v614_v44 = vadd.f32 %v1560_v37, %v613_v42 }
 0x6e6   :  { %v618_v47 = vsel %vm617_vm8, %v1560_v37, %v614_v44 }
 0x6e7   :  { %v623_v49 = vsel %vm620_vm9, %v622_v1, %v618_v47 }
 0x6e8   :  { %v626_v56 = vmul.f32 %v623_v49, %v2075_v29 }
 0x70a   :  { %v689_v15 = vpop.permute.xlu2 %688 }
 0x70b   :  { %v691_v24 = vmul.f32 %v689_v15, %v683_v17 }
 0x70d   :  { %693 = vrot.lane.b32.xlu1 %v691_v24, %s1843_s14 }
 0x715   :  { %211 = vrot.lane.b32.xlu1 %v1923_v19, %s1840_s3 }
 0x73c   :  { %v629_v48 = vpop.permute.xlu0 %628 }
 0x73d   :  { %v631_v18 = vmul.f32 %v629_v48, %v623_v49 }
 0x73f   :  { %633 = vrot.lane.b32.xlu2 %v631_v18, %s1843_s14 }
 0x77f   :  { %v694_v51 = vpop.permute.xlu1 %693 }
 0x780   :  { %v2113_v52 = vadd.f32 %v694_v51, %v686_v50 }
 0x782   :  { %1561 = vtanh.f32 %v2113_v52 }
 0x787   :  { %v212_v53 = vpop.permute.xlu1 %211 }
 0x788   :  { %v1562_v54 = vpop.eup %1561  ;;  %v232_v55 = vmax.f32 %v1923_v19, %v212_v53 }
 0x789   :  { %699 = vrot.lane.b32.xlu0 %v1562_v54, %s1843_s14 }
 0x78a   :  { %251 = vrot.lane.b32.xlu1 %v232_v55, %s1841_s6 }
 0x799   :  { %v634_v57 = vpop.permute.xlu2 %633 }
 0x79a   :  { %v2120_v58 = vadd.f32 %v634_v57, %v626_v56 }
 0x79c   :  { %1563 = vtanh.f32 %v2120_v58 }
 0x7a2   :  { %v1564_v38 = vpop.eup %1563 }
 0x7a3   :  { %639 = vrot.lane.b32.xlu2 %v1564_v38, %s1843_s14 }
 0x7fb   :  { %v700_v59 = vpop.permute.xlu0 %699 }
 0x7fc   :  { %v702_v60 = vmul.f32 %v700_v59, %v683_v17  ;;  %v252_v61 = vpop.permute.xlu1 %251 }
 0x7fd   :  { %v272_v62 = vmax.f32 %v232_v55, %v252_v61  ;;  %v640_v63 = vpop.permute.xlu2 %639 }
 0x7fe   :  { %v642_v19 = vmul.f32 %v640_v63, %v623_v49  ;;  %704 = vrot.lane.b32.xlu0 %v702_v60, %s1841_s6 }
 0x7ff   :  { %1469 = vmatmul.msk.f32.gmra.mxu1 %vm296_vm2, %v272_v62 }
 0x800   :  { %708 = vrot.lane.b32.xlu2 %v642_v19, %s1840_s3 }
 0x85a   :  { %v709_v29 = vpop.permute.xlu2 %708 }
 0x870   :  { %v705_v0 = vpop.permute.xlu0 %704 }
 0x871   :  { %v711_v2 = vsel %vm296_vm2, %v705_v0, %v709_v29  ;;  %1485 = vmatmul.msk.f32.vlgmr.msra.gmra.mxu2 %vm296_vm2, %v705_v0 }
 0x872   :  { %1483 = vmatmul.msk.f32.vlgmr.msra.gmra.mxu3 %vm453_vm7, %v711_v2  ;;  %1044 = vmatpush.msra.mxu2 %v1947_v32 }
 0x873   :  { %981 = vmatpush.msra.mxu3 %v1985_v5 }
 0x874   :  { %1045 = vmatpush.msra.mxu2 %v1949_v33 }
 0x875   :  { %982 = vmatpush.msra.mxu3 %v1987_v6 }
 0x876   :  { %1046 = vmatpush.msra.mxu2 %v1952_v34 }
 0x877   :  { %983 = vmatpush.msra.mxu3 %v1991_v7 }
 0x878   :  { %1047 = vmatpush.msra.mxu2 %v1956_v35 }
 0x879   :  { %984 = vmatpush.msra.mxu3 %v1997_v8 }
 0x87b   :  { %985 = vmatpush.msra.mxu3 %v2003_v9 }
 0x87c   :  { %v356_v5 = vpop.f32.mrf.mxu1 }
 0x87d   :  { %986 = vmatpush.msra.mxu3 %v2009_v10  ;;  %v357_v3 = vadd.f32 %v1974_v43, %v356_v5 }
 0x87f   :  { %987 = vmatpush.msra.mxu3 %v2015_v11 }
 0x881   :  { %988 = vmatpush.msra.mxu3 %v2029_v16 }
 0x8f4   :  { %v791_v6 = vpop.f32.mrf.mxu2 }
 0x8f5   :  { %v794_v4 = vadd.f32 %v791_v6, %v357_v3  ;;  %v732_v12 = vpop.f32.mrf.mxu3 }
 0x8f6   :  { %v733_v7 = vadd.f32 %v2065_v26, %v732_v12 }
 0x8f7   :  { %1565 = vtanh.f32 %v794_v4  ;;  %v1486_v9 = vmul.f32 -1.442695, %v794_v4 }
 0x8f8   :  { %1567 = vtanh.f32 %v733_v7  ;;  %v1484_v10 = vmul.f32 -1.442695, %v733_v7 }
 0x8f9   :  { %1569 = vpow2.f32 %v1486_v9 }
 0x8fa   :  { %1571 = vpow2.f32 %v1484_v10 }
 0x8fd   :  { %v1566_v13 = vpop.eup %1565 }
 0x8fe   :  { %v1568_v8 = vpop.eup %1567  ;;  %817 = vrot.lane.b32.xlu0 %v1566_v13, %s1843_s14 }
 0x8ff   :  { %757 = vrot.lane.b32.xlu1 %v1568_v8, %s1843_s14  ;;  %v1570_v11 = vpop.eup %1569 }
 0x900   :  { %v1572_v16 = vpop.eup %1571  ;;  %v798_v14 = vadd.f32 1.0, %v1570_v11 }
 0x901   :  { %v738_v15 = vadd.f32 1.0, %v1572_v16 }
 0x902   :  { %1573 = vrcp.f32 %v798_v14  ;;  %v810_v44 = vand.u32 2147483648, %v798_v14  ;;  %vm804_vm12 = vweird.f32 %v798_v14  ;;  %v808_v46 = vand.u32 2147483647, %v798_v14 }
 0x903   :  { %1575 = vrcp.f32 %v738_v15  ;;  %v750_v47 = vand.u32 2147483648, %v738_v15  ;;  %vm744_vm14 = vweird.f32 %v738_v15  ;;  %v748_v1 = vand.u32 2147483647, %v738_v15 }
 0x904   :  { %v811_v49 = vor.u32 1.1754944e-38, %v810_v44  ;;  %vm809_vm0 = vcmp.eq.f32.partialorder %v808_v46, 8.507059e+37 }
 0x905   :  { %v751_v50 = vor.u32 1.1754944e-38, %v750_v47  ;;  %vm749_vm1 = vcmp.eq.f32.partialorder %v748_v1, 8.507059e+37 }
 0x908   :  { %v1574_v17 = vpop.eup %1573 }
 0x909   :  { %v1576_v24 = vpop.eup %1575  ;;  %v800_v25 = vmul.f32 %v1574_v17, %v798_v14  ;;  %vm805_vm10 = vweird.f32 %v1574_v17 }
 0x90a   :  { %v740_v30 = vmul.f32 %v1576_v24, %v738_v15  ;;  %vm745_vm11 = vweird.f32 %v1576_v24  ;;  %vm806_vm13 = vmor %vm804_vm12, %vm805_vm10 }
 0x90b   :  { %v801_v31 = vsub.f32 1.0, %v800_v25  ;;  %vm746_vm15 = vmor %vm744_vm14, %vm745_vm11 }
 0x90c   :  { %v741_v37 = vsub.f32 1.0, %v740_v30 }
 0x90d   :  { %v802_v39 = vmul.f32 %v1574_v17, %v801_v31 }
 0x90e   :  { %v742_v40 = vmul.f32 %v1576_v24, %v741_v37 }
 0x90f   :  { %v803_v42 = vadd.f32 %v1574_v17, %v802_v39 }
 0x910   :  { %v743_v45 = vadd.f32 %v1576_v24, %v742_v40 }
 0x911   :  { %v807_v48 = vsel %vm806_vm13, %v1574_v17, %v803_v42 }
 0x912   :  { %v747_v18 = vsel %vm746_vm15, %v1576_v24, %v743_v45  ;;  %v812_v53 = vsel %vm809_vm0, %v811_v49, %v807_v48 }
 0x913   :  { %v752_v56 = vsel %vm749_vm1, %v751_v50, %v747_v18  ;;  %v815_v38 = vmul.f32 %v812_v53, %v2113_v52 }
 0x914   :  { %v755_v19 = vmul.f32 %v752_v56, %v2120_v58 }
 0x970   :  { %v818_v51 = vpop.permute.xlu0 %817 }
 0x971   :  { %v820_v54 = vmul.f32 %v818_v51, %v812_v53  ;;  %v758_v55 = vpop.permute.xlu1 %757 }
 0x972   :  { %v760_v57 = vmul.f32 %v758_v55, %v752_v56 }
 0x973   :  { %822 = vrot.lane.b32.xlu2 %v820_v54, %s1843_s14 }
 0x974   :  { %762 = vrot.lane.b32.xlu0 %v760_v57, %s1843_s14 }
 0x97b   :  { %213 = vrot.lane.b32.xlu2 %v1925_v20, %s1840_s3 }
 0x9cd   :  { %v823_v59 = vpop.permute.xlu2 %822 }
 0x9ce   :  { %v2151_v60 = vadd.f32 %v823_v59, %v815_v38 }
 0x9d0   :  { %1577 = vtanh.f32 %v2151_v60 }
 0x9d5   :  { %v214_v61 = vpop.permute.xlu2 %213 }
 0x9d6   :  { %v1578_v62 = vpop.eup %1577  ;;  %v233_v63 = vmax.f32 %v1925_v20, %v214_v61 }
 0x9d7   :  { %828 = vrot.lane.b32.xlu1 %v1578_v62, %s1843_s14 }
 0x9d8   :  { %253 = vrot.lane.b32.xlu2 %v233_v63, %s1841_s6 }
 0x9e6   :  { %v763_v29 = vpop.permute.xlu0 %762 }
 0x9e7   :  { %v2158_v0 = vadd.f32 %v763_v29, %v755_v19 }
 0x9e9   :  { %1579 = vtanh.f32 %v2158_v0 }
 0x9ef   :  { %v1580_v52 = vpop.eup %1579 }
 0x9f0   :  { %768 = vrot.lane.b32.xlu0 %v1580_v52, %s1843_s14 }
 0xa32   :  { %v254_v2 = vpop.permute.xlu2 %253 }
 0xa33   :  { %v273_v5 = vmax.f32 %v233_v63, %v254_v2 }
 0xa35   :  { %1470 = vmatmul.msk.f32.gmra.mxu1 %vm296_vm2, %v273_v5 }
 0xa49   :  { %v829_v3 = vpop.permute.xlu1 %828 }
 0xa4a   :  { %v831_v20 = vmul.f32 %v829_v3, %v812_v53 }
 0xa4c   :  { %833 = vrot.lane.b32.xlu1 %v831_v20, %s1841_s6 }
 0xa62   :  { %v769_v6 = vpop.permute.xlu0 %768 }
 0xa63   :  { %v771_v4 = vmul.f32 %v769_v6, %v752_v56 }
 0xa65   :  { %837 = vrot.lane.b32.xlu0 %v771_v4, %s1840_s3 }
 0xab2   :  { %v359_v13 = vpop.f32.mrf.mxu1 }
 0xab3   :  { %v360_v8 = vadd.f32 %v1974_v43, %v359_v13 }
 0xabe   :  { %v834_v58 = vpop.permute.xlu1 %833 }
 0xabf   :  { %1489 = vmatmul.msk.f32.vlgmr.msrb.gmra.mxu3 %vm296_vm2, %v834_v58 }
 0xac0   :  { %1302 = vmatpush.msrb.mxu3 %v1947_v32 }
 0xac2   :  { %1303 = vmatpush.msrb.mxu3 %v1949_v33 }
 0xac4   :  { %1304 = vmatpush.msrb.mxu3 %v1952_v34 }
 0xac6   :  { %1305 = vmatpush.msrb.mxu3 %v1956_v35 }
 0xad7   :  { %v838_v12 = vpop.permute.xlu0 %837 }
 0xad8   :  { %v840_v7 = vsel %vm296_vm2, %v834_v58, %v838_v12 }
 0xad9   :  { %1487 = vmatmul.msk.f32.vlgmr.msrb.gmra.mxu2 %vm453_vm7, %v840_v7 }
 0xada   :  { %1173 = vmatpush.msrb.mxu2 %v1947_v32 }
 0xadc   :  { %1174 = vmatpush.msrb.mxu2 %v1949_v33 }
 0xade   :  { %1175 = vmatpush.msrb.mxu2 %v1952_v34 }
 0xae0   :  { %1176 = vmatpush.msrb.mxu2 %v1956_v35 }
 0xb42   :  { %v920_v9 = vpop.f32.mrf.mxu3 }
 0xb43   :  { %v923_v10 = vadd.f32 %v920_v9, %v360_v8 }
 0xb45   :  { %1581 = vtanh.f32 %v923_v10  ;;  %v1490_v33 = vmul.f32 -1.442695, %v923_v10 }
 0xb4b   :  { %v1582_v11 = vpop.eup %1581 }
 0xb4c   :  { %946 = vrot.lane.b32.xlu1 %v1582_v11, %s1843_s14 }
 0xb5c   :  { %v861_v16 = vpop.f32.mrf.mxu2 }
 0xb5d   :  { %v862_v14 = vadd.f32 %v2065_v26, %v861_v16 }
 0xb5f   :  { %1583 = vtanh.f32 %v862_v14  ;;  %v1488_v34 = vmul.f32 -1.442695, %v862_v14 }
 0xb60   :  { %1585 = vpow2.f32 %v1490_v33 }
 0xb61   :  { %1587 = vpow2.f32 %v1488_v34 }
 0xb65   :  { %v1584_v32 = vpop.eup %1583 }
 0xb66   :  { %886 = vrot.lane.b32.xlu2 %v1584_v32, %s1843_s14  ;;  %v1586_v35 = vpop.eup %1585 }
 0xb67   :  { %v1588_v15 = vpop.eup %1587  ;;  %v927_v17 = vadd.f32 1.0, %v1586_v35 }
 0xb68   :  { %v867_v24 = vadd.f32 1.0, %v1588_v15 }
 0xb69   :  { %1589 = vrcp.f32 %v927_v17  ;;  %v939_v46 = vand.u32 2147483648, %v927_v17  ;;  %vm933_vm4 = vweird.f32 %v927_v17  ;;  %v937_v47 = vand.u32 2147483647, %v927_v17 }
 0xb6a   :  { %1591 = vrcp.f32 %v867_v24  ;;  %v879_v48 = vand.u32 2147483648, %v867_v24  ;;  %vm873_vm8 = vweird.f32 %v867_v24  ;;  %v877_v18 = vand.u32 2147483647, %v867_v24 }
 0xb6b   :  { %v940_v50 = vor.u32 1.1754944e-38, %v939_v46  ;;  %vm938_vm10 = vcmp.eq.f32.partialorder %v937_v47, 8.507059e+37 }
 0xb6c   :  { %v880_v55 = vor.u32 1.1754944e-38, %v879_v48  ;;  %vm878_vm11 = vcmp.eq.f32.partialorder %v877_v18, 8.507059e+37 }
 0xb6f   :  { %v1590_v25 = vpop.eup %1589 }
 0xb70   :  { %v1592_v30 = vpop.eup %1591  ;;  %v929_v31 = vmul.f32 %v1590_v25, %v927_v17  ;;  %vm934_vm3 = vweird.f32 %v1590_v25 }
 0xb71   :  { %v869_v37 = vmul.f32 %v1592_v30, %v867_v24  ;;  %vm874_vm5 = vweird.f32 %v1592_v30  ;;  %vm935_vm6 = vmor %vm933_vm4, %vm934_vm3 }
 0xb72   :  { %v930_v39 = vsub.f32 1.0, %v929_v31  ;;  %vm875_vm9 = vmor %vm873_vm8, %vm874_vm5 }
 0xb73   :  { %v870_v40 = vsub.f32 1.0, %v869_v37 }
 0xb74   :  { %v931_v42 = vmul.f32 %v1590_v25, %v930_v39 }
 0xb75   :  { %v871_v44 = vmul.f32 %v1592_v30, %v870_v40 }
 0xb76   :  { %v932_v45 = vadd.f32 %v1590_v25, %v931_v42 }
 0xb77   :  { %v872_v1 = vadd.f32 %v1592_v30, %v871_v44 }
 0xb78   :  { %v936_v49 = vsel %vm935_vm6, %v1590_v25, %v932_v45 }
 0xb79   :  { %v876_v51 = vsel %vm875_vm9, %v1592_v30, %v872_v1  ;;  %v941_v54 = vsel %vm938_vm10, %v940_v50, %v936_v49 }
 0xb7a   :  { %v881_v57 = vsel %vm878_vm11, %v880_v55, %v876_v51  ;;  %v944_v61 = vmul.f32 %v941_v54, %v2151_v60 }
 0xb7b   :  { %v884_v19 = vmul.f32 %v881_v57, %v2158_v0 }
 0xbbe   :  { %v947_v53 = vpop.permute.xlu1 %946 }
 0xbbf   :  { %v949_v56 = vmul.f32 %v947_v53, %v941_v54 }
 0xbc0   :  { %v887_v38 = vpop.permute.xlu2 %886 }
 0xbc1   :  { %v889_v59 = vmul.f32 %v887_v38, %v881_v57  ;;  %951 = vrot.lane.b32.xlu0 %v949_v56, %s1843_s14 }
 0xbc3   :  { %891 = vrot.lane.b32.xlu1 %v889_v59, %s1843_s14 }
 0xbc9   :  { %215 = vrot.lane.b32.xlu0 %v1927_v21, %s1840_s3 }
 0xc33   :  { %v952_v62 = vpop.permute.xlu0 %951 }
 0xc34   :  { %v2185_v63 = vadd.f32 %v952_v62, %v944_v61 }
 0xc35   :  { %v892_v29 = vpop.permute.xlu1 %891 }
 0xc36   :  { %1593 = vtanh.f32 %v2185_v63  ;;  %v2189_v52 = vadd.f32 %v892_v29, %v884_v19 }
 0xc38   :  { %1595 = vtanh.f32 %v2189_v52 }
 0xc3b   :  { %v216_v2 = vpop.permute.xlu0 %215 }
 0xc3c   :  { %v1594_v5 = vpop.eup %1593  ;;  %v234_v3 = vmax.f32 %v1927_v21, %v216_v2 }
 0xc3d   :  { %957 = vrot.lane.b32.xlu2 %v1594_v5, %s1843_s14 }
 0xc3e   :  { %v1596_v20 = vpop.eup %1595  ;;  %255 = vrot.lane.b32.xlu0 %v234_v3, %s1841_s6 }
 0xc3f   :  { %897 = vrot.lane.b32.xlu1 %v1596_v20, %s1843_s14 }
 0xc97   :  { %v958_v60 = vpop.permute.xlu2 %957 }
 0xc98   :  { %v960_v0 = vmul.f32 %v958_v60, %v941_v54 }
 0xc9a   :  { %962 = vrot.lane.b32.xlu2 %v960_v0, %s1841_s6 }
 0xcb0   :  { %v256_v6 = vpop.permute.xlu0 %255 }
 0xcb1   :  { %v274_v4 = vmax.f32 %v234_v3, %v256_v6  ;;  %v898_v58 = vpop.permute.xlu1 %897 }
 0xcb2   :  { %v900_v12 = vmul.f32 %v898_v58, %v881_v57 }
 0xcb3   :  { %1471 = vmatmul.msk.f32.gmra.mxu1 %vm296_vm2, %v274_v4 }
 0xcb4   :  { %966 = vrot.lane.b32.xlu1 %v900_v12, %s1840_s3 }
 0xcf4   :  { %v963_v21 = vpop.permute.xlu2 %962 }
 0xcf5   :  { %1493 = vmatmul.msk.f32.vlgmr.msra.gmra.mxu2 %vm296_vm2, %v963_v21 }
 0xd26   :  { %v967_v7 = vpop.permute.xlu1 %966 }
 0xd27   :  { %v969_v13 = vsel %vm296_vm2, %v963_v21, %v967_v7 }
 0xd28   :  { %1491 = vmatmul.msk.f32.vlgmr.msra.gmra.mxu3 %vm453_vm7, %v969_v13 }
 0xd30   :  { %v362_v8 = vpop.f32.mrf.mxu1 }
 0xd31   :  { %v363_v9 = vadd.f32 %v1974_v43, %v362_v8 }
 0xd78   :  { %v1049_v10 = vpop.f32.mrf.mxu2 }
 0xd79   :  { %v1052_v11 = vadd.f32 %v1049_v10, %v363_v9  ;;  %v2231_v9 = vld [vmem:[%s2304_s4] ss:$0 sm:$0xff] }
 0xd7b   :  { %1597 = vtanh.f32 %v1052_v11  ;;  %v1494_v33 = vmul.f32 -1.442695, %v1052_v11 }
 0xd81   :  { %v1598_v16 = vpop.eup %1597 }
 0xd82   :  { %1075 = vrot.lane.b32.xlu2 %v1598_v16, %s1843_s14 }
 0xdab   :  { %v990_v14 = vpop.f32.mrf.mxu3 }
 0xdac   :  { %v991_v32 = vadd.f32 %v2065_v26, %v990_v14 }
 0xdae   :  { %1599 = vtanh.f32 %v991_v32  ;;  %v1492_v46 = vmul.f32 -1.442695, %v991_v32 }
 0xdaf   :  { %1601 = vpow2.f32 %v1494_v33 }
 0xdb4   :  { %v1600_v34 = vpop.eup %1599 }
 0xdb5   :  { %1015 = vrot.lane.b32.xlu0 %v1600_v34, %s1843_s14  ;;  %v1602_v35 = vpop.eup %1601 }
 0xdb6   :  { %v1056_v15 = vadd.f32 1.0, %v1602_v35 }
 0xdb8   :  { %1603 = vrcp.f32 %v1056_v15  ;;  %v1068_v31 = vand.u32 2147483648, %v1056_v15  ;;  %vm1062_vm13 = vweird.f32 %v1056_v15  ;;  %v1066_v37 = vand.u32 2147483647, %v1056_v15 }
 0xdb9   :  { %1605 = vpow2.f32 %v1492_v46 }
 0xdba   :  { %v1069_v40 = vor.u32 1.1754944e-38, %v1068_v31  ;;  %vm1067_vm15 = vcmp.eq.f32.partialorder %v1066_v37, 8.507059e+37 }
 0xdbe   :  { %v1604_v17 = vpop.eup %1603 }
 0xdbf   :  { %v1058_v43 = vmul.f32 %v1604_v17, %v1056_v15  ;;  %vm1063_vm12 = vweird.f32 %v1604_v17  ;;  %v1606_v47 = vpop.eup %1605 }
 0xdc0   :  { %vm1064_vm14 = vmor %vm1062_vm13, %vm1063_vm12  ;;  %v996_v1 = vadd.f32 1.0, %v1606_v47 }
 0xdc1   :  { %v1059_v24 = vsub.f32 1.0, %v1058_v43 }
 0xdc2   :  { %1607 = vrcp.f32 %v996_v1  ;;  %v1008_v53 = vand.u32 2147483648, %v996_v1  ;;  %vm1002_vm1 = vweird.f32 %v996_v1  ;;  %v1006_v54 = vand.u32 2147483647, %v996_v1 }
 0xdc3   :  { %v1060_v25 = vmul.f32 %v1604_v17, %v1059_v24 }
 0xdc4   :  { %v1009_v56 = vor.u32 1.1754944e-38, %v1008_v53  ;;  %vm1007_vm4 = vcmp.eq.f32.partialorder %v1006_v54, 8.507059e+37 }
 0xdc5   :  { %v1061_v30 = vadd.f32 %v1604_v17, %v1060_v25 }
 0xdc7   :  { %v1065_v39 = vsel %vm1064_vm14, %v1604_v17, %v1061_v30 }
 0xdc8   :  { %v1070_v44 = vsel %vm1067_vm15, %v1069_v40, %v1065_v39  ;;  %v1608_v48 = vpop.eup %1607 }
 0xdc9   :  { %v998_v49 = vmul.f32 %v1608_v48, %v996_v1  ;;  %vm1003_vm0 = vweird.f32 %v1608_v48  ;;  %v1073_v61 = vmul.f32 %v1070_v44, %v2185_v63 }
 0xdca   :  { %vm1004_vm3 = vmor %vm1002_vm1, %vm1003_vm0 }
 0xdcb   :  { %v999_v18 = vsub.f32 1.0, %v998_v49 }
 0xdcd   :  { %v1000_v50 = vmul.f32 %v1608_v48, %v999_v18 }
 0xdcf   :  { %v1001_v51 = vadd.f32 %v1608_v48, %v1000_v50 }
 0xdd1   :  { %v1005_v55 = vsel %vm1004_vm3, %v1608_v48, %v1001_v51 }
 0xdd2   :  { %v1010_v38 = vsel %vm1007_vm4, %v1009_v56, %v1005_v55 }
 0xdd3   :  { %v1013_v3 = vmul.f32 %v1010_v38, %v2189_v52 }
 0xddc   :  { %v1076_v42 = vpop.permute.xlu2 %1075 }
 0xddd   :  { %v1078_v45 = vmul.f32 %v1076_v42, %v1070_v44 }
 0xddf   :  { %1080 = vrot.lane.b32.xlu1 %v1078_v45, %s1843_s14 }
 0xde7   :  { %217 = vrot.lane.b32.xlu1 %v1929_v22, %s1840_s3 }
 0xe27   :  { %v1016_v57 = vpop.permute.xlu0 %1015 }
 0xe28   :  { %v1018_v59 = vmul.f32 %v1016_v57, %v1010_v38 }
 0xe2a   :  { %1020 = vrot.lane.b32.xlu2 %v1018_v59, %s1843_s14 }
 0xe51   :  { %v1081_v62 = vpop.permute.xlu1 %1080 }
 0xe52   :  { %v2211_v19 = vadd.f32 %v1081_v62, %v1073_v61 }
 0xe54   :  { %1609 = vtanh.f32 %v2211_v19 }
 0xe59   :  { %v218_v29 = vpop.permute.xlu1 %217 }
 0xe5a   :  { %v1610_v2 = vpop.eup %1609  ;;  %v235_v5 = vmax.f32 %v1929_v22, %v218_v29 }
 0xe5b   :  { %1086 = vrot.lane.b32.xlu0 %v1610_v2, %s1843_s14 }
 0xe5c   :  { %257 = vrot.lane.b32.xlu1 %v235_v5, %s1841_s6 }
 0xe84   :  { %v1021_v20 = vpop.permute.xlu2 %1020 }
 0xe85   :  { %v2218_v60 = vadd.f32 %v1021_v20, %v1013_v3 }
 0xe87   :  { %1611 = vtanh.f32 %v2218_v60 }
 0xe8d   :  { %v1612_v63 = vpop.eup %1611 }
 0xe8e   :  { %1026 = vrot.lane.b32.xlu2 %v1612_v63, %s1843_s14 }
 0xecd   :  { %v1087_v0 = vpop.permute.xlu0 %1086 }
 0xece   :  { %v1089_v6 = vmul.f32 %v1087_v0, %v1070_v44  ;;  %v258_v4 = vpop.permute.xlu1 %257 }
 0xecf   :  { %v275_v58 = vmax.f32 %v235_v5, %v258_v4 }
 0xed0   :  { %1091 = vrot.lane.b32.xlu0 %v1089_v6, %s1841_s6 }
 0xed1   :  { %1472 = vmatmul.msk.f32.gmra.mxu1 %vm296_vm2, %v275_v58 }
 0xee8   :  { %v1027_v22 = vpop.permute.xlu2 %1026 }
 0xee9   :  { %v1029_v12 = vmul.f32 %v1027_v22, %v1010_v38 }
 0xeeb   :  { %1095 = vrot.lane.b32.xlu2 %v1029_v12, %s1840_s3  ;;  %v2257_v12 = vld [vmem:[%s2307_s7] ss:$0 sm:$0xff] }
 0xf42   :  { %v1092_v52 = vpop.permute.xlu0 %1091 }
 0xf43   :  { %1497 = vmatmul.msk.f32.vlgmr.msrb.gmra.mxu2 %vm296_vm2, %v1092_v52 }
 0xf45   :  { %v1096_v21 = vpop.permute.xlu2 %1095 }
 0xf46   :  { %v1098_v7 = vsel %vm296_vm2, %v1092_v52, %v1096_v21  ;;  %v369_v21 = vadd.f32 %v2231_v9, %v1969_v41 }
 0xf47   :  { %1495 = vmatmul.msk.f32.vlgmr.msrb.gmra.mxu1 %vm453_vm7, %v1098_v7 }
 0xf4e   :  { %v365_v13 = vpop.f32.mrf.mxu1 }
 0xf4f   :  { %v366_v10 = vadd.f32 %v2231_v9, %v365_v13 }
 0xfc4   :  { %v1119_v8 = vpop.f32.mrf.mxu1 }
 0xfc5   :  { %v1120_v11 = vadd.f32 %v2065_v26, %v1119_v8 }
 0xfc6   :  { %v1178_v16 = vpop.f32.mrf.mxu2 }
 0xfc7   :  { %1613 = vtanh.f32 %v1120_v11  ;;  %v1181_v14 = vadd.f32 %v1178_v16, %v366_v10  ;;  %v1496_v34 = vmul.f32 -1.442695, %v1120_v11 }
 0xfc9   :  { %1615 = vtanh.f32 %v1181_v14  ;;  %v1498_v35 = vmul.f32 -1.442695, %v1181_v14 }
 0xfca   :  { %1617 = vpow2.f32 %v1496_v34 }
 0xfcb   :  { %1619 = vpow2.f32 %v1498_v35 }
 0xfcd   :  { %v1614_v32 = vpop.eup %1613 }
 0xfce   :  { %1144 = vrot.lane.b32.xlu1 %v1614_v32, %s1843_s14 }
 0xfcf   :  { %v1616_v33 = vpop.eup %1615 }
 0xfd0   :  { %1204 = vrot.lane.b32.xlu0 %v1616_v33, %s1843_s14  ;;  %v1618_v15 = vpop.eup %1617 }
 0xfd1   :  { %v1620_v17 = vpop.eup %1619  ;;  %v1125_v43 = vadd.f32 1.0, %v1618_v15 }
 0xfd2   :  { %v1185_v24 = vadd.f32 1.0, %v1620_v17 }
 0xfd3   :  { %1621 = vrcp.f32 %v1125_v43  ;;  %v1137_v45 = vand.u32 2147483648, %v1125_v43  ;;  %vm1131_vm6 = vweird.f32 %v1125_v43  ;;  %v1135_v46 = vand.u32 2147483647, %v1125_v43 }
 0xfd4   :  { %1623 = vrcp.f32 %v1185_v24  ;;  %v1197_v48 = vand.u32 2147483648, %v1185_v24  ;;  %vm1191_vm10 = vweird.f32 %v1185_v24  ;;  %v1195_v18 = vand.u32 2147483647, %v1185_v24 }
 0xfd5   :  { %v1138_v49 = vor.u32 1.1754944e-38, %v1137_v45  ;;  %vm1136_vm11 = vcmp.eq.f32.partialorder %v1135_v46, 8.507059e+37 }
 0xfd6   :  { %v1198_v55 = vor.u32 1.1754944e-38, %v1197_v48  ;;  %vm1196_vm13 = vcmp.eq.f32.partialorder %v1195_v18, 8.507059e+37 }
 0xfd9   :  { %v1622_v26 = vpop.eup %1621 }
 0xfda   :  { %v1624_v25 = vpop.eup %1623  ;;  %v1127_v30 = vmul.f32 %v1622_v26, %v1125_v43  ;;  %vm1132_vm5 = vweird.f32 %v1622_v26 }
 0xfdb   :  { %v1187_v31 = vmul.f32 %v1624_v25, %v1185_v24  ;;  %vm1133_vm8 = vmor %vm1131_vm6, %vm1132_vm5  ;;  %vm1192_vm9 = vweird.f32 %v1624_v25 }
 0xfdc   :  { %v1128_v37 = vsub.f32 1.0, %v1127_v30  ;;  %vm1193_vm12 = vmor %vm1191_vm10, %vm1192_vm9 }
 0xfdd   :  { %v1188_v39 = vsub.f32 1.0, %v1187_v31 }
 0xfde   :  { %v1129_v40 = vmul.f32 %v1622_v26, %v1128_v37 }
 0xfdf   :  { %v1189_v42 = vmul.f32 %v1624_v25, %v1188_v39 }
 0xfe0   :  { %v1130_v44 = vadd.f32 %v1622_v26, %v1129_v40 }
 0xfe1   :  { %v1190_v47 = vadd.f32 %v1624_v25, %v1189_v42 }
 0xfe2   :  { %v1134_v1 = vsel %vm1133_vm8, %v1622_v26, %v1130_v44 }
 0xfe3   :  { %v1139_v51 = vsel %vm1136_vm11, %v1138_v49, %v1134_v1  ;;  %v1194_v53 = vsel %vm1193_vm12, %v1624_v25, %v1190_v47  ;;  %vm278_vm11 = vcmp.ge.f32.partialorder %v1931_v23, %v1936_v27  ;;  %vm292_vm12 = vcmp.ge.f32.partialorder %v1940_v28, %v1959_v36 }
 0xfe4   :  { %v1199_v57 = vsel %vm1196_vm13, %v1198_v55, %v1194_v53  ;;  %v1142_v2 = vmul.f32 %v1139_v51, %v2218_v60 }
 0xfe5   :  { %v1202_v59 = vmul.f32 %v1199_v57, %v2211_v19 }
0x1040   :  { %v1145_v50 = vpop.permute.xlu1 %1144 }
0x1041   :  { %v1147_v54 = vmul.f32 %v1145_v50, %v1139_v51 }
0x1042   :  { %v1205_v56 = vpop.permute.xlu0 %1204 }
0x1043   :  { %1149 = vrot.lane.b32.xlu0 %v1147_v54, %s1843_s14  ;;  %v1207_v38 = vmul.f32 %v1205_v56, %v1199_v57 }
0x1045   :  { %1209 = vrot.lane.b32.xlu2 %v1207_v38, %s1843_s14 }
0x109f   :  { %v1210_v61 = vpop.permute.xlu2 %1209 }
0x10a0   :  { %v2240_v62 = vadd.f32 %v1210_v61, %v1202_v59 }
0x10a2   :  { %1625 = vtanh.f32 %v2240_v62 }
0x10a8   :  { %v1626_v29 = vpop.eup %1625 }
0x10a9   :  { %1215 = vrot.lane.b32.xlu1 %v1626_v29, %s1843_s14 }
0x10b5   :  { %v1150_v5 = vpop.permute.xlu0 %1149 }
0x10b6   :  { %v2245_v3 = vadd.f32 %v1150_v5, %v1142_v2 }
0x10b8   :  { %1627 = vtanh.f32 %v2245_v3 }
0x10be   :  { %v1628_v20 = vpop.eup %1627 }
0x10bf   :  { %1155 = vrot.lane.b32.xlu2 %v1628_v20, %s1843_s14 }
0x1119   :  { %v1156_v63 = vpop.permute.xlu2 %1155 }
0x111a   :  { %v1158_v19 = vmul.f32 %v1156_v63, %v1139_v51  ;;  %v277_v63 = vld [vmem:[%s2302_s2] sm:$0x1] }
0x111b   :  { %v1216_v0 = vpop.permute.xlu1 %1215 }
0x111c   :  { %1224 = vrot.lane.b32.xlu1 %v1158_v19, %s1840_s3  ;;  %v1218_v6 = vmul.f32 %v1216_v0, %v1199_v57  ;;  %v283_v19 = vadd.s32 6, %v277_v63 }
0x111e   :  { %1220 = vrot.lane.b32.xlu0 %v1218_v6, %s1841_s6  ;;  %v285_v0 = vperm.slane %v283_v19, 0 }
0x118e   :  { %v1225_v4 = vpop.permute.xlu1 %1224 }
0x1190   :  { %v1221_v58 = vpop.permute.xlu0 %1220 }
0x1191   :  { %v1227_v60 = vsel %vm296_vm2, %v1221_v58, %v1225_v4  ;;  %1501 = vmatmul.msk.f32.vlgmr.msrb.gmra.mxu3 %vm296_vm2, %v1221_v58 }
0x1192   :  { %1499 = vmatmul.msk.f32.vlgmr.msrb.gmra.mxu0 %vm453_vm7, %v1227_v60  ;;  %v284_v60 = vadd.s32 1, %v283_v19 }
0x120f   :  { %v1248_v22 = vpop.f32.mrf.mxu0 }
0x1210   :  { %v1249_v52 = vadd.f32 %v2257_v12, %v1248_v22  ;;  %v286_v22 = vperm.slane %v284_v60, 0 }
0x1212   :  { %1629 = vtanh.f32 %v1249_v52  ;;  %v1500_v11 = vmul.f32 -1.442695, %v1249_v52 }
0x1214   :  { %v1307_v7 = vpop.f32.mrf.mxu3 }
0x1215   :  { %v1310_v13 = vadd.f32 %v1307_v7, %v369_v21 }
0x1217   :  { %1631 = vtanh.f32 %v1310_v13  ;;  %v1502_v34 = vmul.f32 -1.442695, %v1310_v13 }
0x1218   :  { %v1630_v8 = vpop.eup %1629  ;;  %1633 = vpow2.f32 %v1500_v11 }
0x1219   :  { %1273 = vrot.lane.b32.xlu2 %v1630_v8, %s1843_s14 }
0x121d   :  { %v1632_v10 = vpop.eup %1631 }
0x121e   :  { %1333 = vrot.lane.b32.xlu0 %v1632_v10, %s1843_s14  ;;  %v1634_v16 = vpop.eup %1633 }
0x121f   :  { %v1254_v14 = vadd.f32 1.0, %v1634_v16 }
0x1221   :  { %1635 = vrcp.f32 %v1254_v14  ;;  %v1266_v17 = vand.u32 2147483648, %v1254_v14  ;;  %vm1260_vm15 = vweird.f32 %v1254_v14  ;;  %v1264_v43 = vand.u32 2147483647, %v1254_v14 }
0x1222   :  { %1637 = vpow2.f32 %v1502_v34 }
0x1223   :  { %v1267_v25 = vor.u32 1.1754944e-38, %v1266_v17  ;;  %vm1265_vm1 = vcmp.eq.f32.partialorder %v1264_v43, 8.507059e+37 }
0x1227   :  { %v1636_v32 = vpop.eup %1635 }
0x1228   :  { %v1256_v33 = vmul.f32 %v1636_v32, %v1254_v14  ;;  %vm1261_vm14 = vweird.f32 %v1636_v32  ;;  %v1638_v15 = vpop.eup %1637 }
0x1229   :  { %vm1262_vm0 = vmor %vm1260_vm15, %vm1261_vm14  ;;  %v1314_v24 = vadd.f32 1.0, %v1638_v15 }
0x122a   :  { %v1257_v35 = vsub.f32 1.0, %v1256_v33 }
0x122b   :  { %1639 = vrcp.f32 %v1314_v24  ;;  %v1326_v46 = vand.u32 2147483648, %v1314_v24  ;;  %vm1320_vm4 = vweird.f32 %v1314_v24  ;;  %v1324_v47 = vand.u32 2147483647, %v1314_v24 }
0x122c   :  { %v1258_v41 = vmul.f32 %v1636_v32, %v1257_v35 }
0x122d   :  { %v1327_v48 = vor.u32 1.1754944e-38, %v1326_v46  ;;  %vm1325_vm6 = vcmp.eq.f32.partialorder %v1324_v47, 8.507059e+37 }
0x122e   :  { %v1259_v9 = vadd.f32 %v1636_v32, %v1258_v41 }
0x1230   :  { %v1263_v26 = vsel %vm1262_vm0, %v1636_v32, %v1259_v9 }
0x1231   :  { %v1268_v31 = vsel %vm1265_vm1, %v1267_v25, %v1263_v26  ;;  %v1640_v39 = vpop.eup %1639 }
0x1232   :  { %v1316_v40 = vmul.f32 %v1640_v39, %v1314_v24  ;;  %vm1321_vm3 = vweird.f32 %v1640_v39  ;;  %v1271_v51 = vmul.f32 %v1268_v31, %v2245_v3 }
0x1233   :  { %vm1322_vm5 = vmor %vm1320_vm4, %vm1321_vm3 }
0x1234   :  { %v1317_v42 = vsub.f32 1.0, %v1316_v40 }
0x1236   :  { %v1318_v44 = vmul.f32 %v1640_v39, %v1317_v42 }
0x1238   :  { %v1319_v45 = vadd.f32 %v1640_v39, %v1318_v44 }
0x123a   :  { %v1323_v1 = vsel %vm1322_vm5, %v1640_v39, %v1319_v45 }
0x123b   :  { %v1328_v18 = vsel %vm1325_vm6, %v1327_v48, %v1323_v1 }
0x123c   :  { %v1331_v55 = vmul.f32 %v1328_v18, %v2240_v62 }
0x1273   :  { %v1274_v30 = vpop.permute.xlu2 %1273 }
0x1274   :  { %v1276_v37 = vmul.f32 %v1274_v30, %v1268_v31  ;;  %v279_v30 = vadd.s32 1, %v277_v63 }
0x1276   :  { %1278 = vrot.lane.b32.xlu1 %v1276_v37, %s1843_s14  ;;  %v281_v37 = vperm.slane %v279_v30, 0 }
0x1290   :  { %v1334_v49 = vpop.permute.xlu0 %1333 }
0x1291   :  { %v1336_v50 = vmul.f32 %v1334_v49, %v1328_v18 }
0x1293   :  { %1338 = vrot.lane.b32.xlu2 %v1336_v50, %s1843_s14 }
0x12e8   :  { %v1279_v53 = vpop.permute.xlu1 %1278 }
0x12e9   :  { %v1281_v54 = vadd.f32 %v1279_v53, %v1271_v51 }
0x12eb   :  { %1641 = vtanh.f32 %v1281_v54 }
0x12ed   :  { %v1339_v56 = vpop.permute.xlu2 %1338 }
0x12ee   :  { %v1341_v57 = vadd.f32 %v1339_v56, %v1331_v55 }
0x12f0   :  { %1643 = vtanh.f32 %v1341_v57 }
0x12f1   :  { %v1642_v38 = vpop.eup %1641 }
0x12f2   :  { %1284 = vrot.lane.b32.xlu0 %v1642_v38, %s1843_s14 }
0x12f6   :  { %v1644_v59 = vpop.eup %1643 }
0x12f7   :  { %1344 = vrot.lane.b32.xlu1 %v1644_v59, %s1843_s14 }
0x1364   :  { %v1285_v61 = vpop.permute.xlu0 %1284 }
0x1365   :  { %v1287_v29 = vmul.f32 %v1285_v61, %v1268_v31  ;;  %v1524_v31 = vld [vmem:[%s2302_s2] ss:$0 sm:$0xff]  ;;  %s1845_s2 = smov [#allocation11]  }
0x1366   :  { %v282_v23 = vsel %vm278_vm11, %v1524_v31, %v281_v37  ;;  %s1427_s27 = sshll.u32 %s1845_s2, 4  ;;  %s1428_s27 = int_to_ptr.vmem [resolvable:$true] %s1427_s27 }
0x1367   :  { %1353 = vrot.lane.b32.xlu0 %v1287_v29, %s1840_s3 }
0x1369   :  { %v1345_v2 = vpop.permute.xlu1 %1344 }
0x136a   :  { %v1347_v5 = vmul.f32 %v1345_v2, %v1328_v18 }
0x136c   :  { %1349 = vrot.lane.b32.xlu2 %v1347_v5, %s1841_s6 }
0x136f   :  { %287 = vrot.lane.b32.xlu0 %v285_v0, %s1841_s6 }
0x13c6   :  { %v1350_v3 = vpop.permute.xlu2 %1349 }
0x13d9   :  { %v1354_v20 = vpop.permute.xlu0 %1353 }
0x13da   :  { %v1356_v62 = vsel %vm296_vm2, %v1350_v3, %v1354_v20 }
0x13db   :  { %1503 = vmatmul.msk.f32.vlgmr.msra.gmra.mxu1 %vm453_vm7, %v1356_v62 }
0x13e1   :  { %v288_v9 = vpop.permute.xlu0 %287 }
0x1458   :  { %v1377_v6 = vpop.f32.mrf.mxu1 }
0x1459   :  { %v1378_v4 = vadd.f32 %v2257_v12, %v1377_v6 }
0x145b   :  { %1645 = vtanh.f32 %v1378_v4  ;;  %v1504_v52 = vmul.f32 -1.442695, %v1378_v4 }
0x145d   :  { %1647 = vpow2.f32 %v1504_v52 }
0x1461   :  { %v1646_v58 = vpop.eup %1645 }
0x1462   :  { %1402 = vrot.lane.b32.xlu1 %v1646_v58, %s1843_s14 }
0x1463   :  { %v1648_v21 = vpop.eup %1647 }
0x1464   :  { %v1383_v7 = vadd.f32 1.0, %v1648_v21 }
0x1466   :  { %1649 = vrcp.f32 %v1383_v7  ;;  %v1395_v12 = vand.u32 2147483648, %v1383_v7  ;;  %vm1389_vm8 = vweird.f32 %v1383_v7  ;;  %v1393_v14 = vand.u32 2147483647, %v1383_v7 }
0x1468   :  { %v1396_v33 = vor.u32 1.1754944e-38, %v1395_v12  ;;  %vm1394_vm10 = vcmp.eq.f32.partialorder %v1393_v14, 8.507059e+37 }
0x146a   :  { %289 = vrot.lane.b32.xlu1 %v286_v22, %s1841_s6 }
0x146c   :  { %v1650_v13 = vpop.eup %1649 }
0x146d   :  { %v1385_v8 = vmul.f32 %v1650_v13, %v1383_v7  ;;  %vm1390_vm7 = vweird.f32 %v1650_v13 }
0x146e   :  { %vm1391_vm9 = vmor %vm1389_vm8, %vm1390_vm7 }
0x146f   :  { %v1386_v10 = vsub.f32 1.0, %v1385_v8 }
0x1471   :  { %v1387_v11 = vmul.f32 %v1650_v13, %v1386_v10 }
0x1473   :  { %v1388_v16 = vadd.f32 %v1650_v13, %v1387_v11 }
0x1475   :  { %v1392_v32 = vsel %vm1391_vm9, %v1650_v13, %v1388_v16 }
0x1476   :  { %v1397_v35 = vsel %vm1394_vm10, %v1396_v33, %v1392_v32 }
0x1477   :  { %v1400_v43 = vmul.f32 %v1397_v35, %v1281_v54 }
0x14d4   :  { %v1403_v34 = vpop.permute.xlu1 %1402 }
0x14d5   :  { %v1405_v41 = vmul.f32 %v1403_v34, %v1397_v35 }
0x14d7   :  { %1407 = vrot.lane.b32.xlu2 %v1405_v41, %s1843_s14 }
0x14dc   :  { %v290_v15 = vpop.permute.xlu1 %289 }
0x14dd   :  { %v291_v17 = vsel %vm278_vm11, %v288_v9, %v290_v15 }
0x14de   :  { %293 = vrot.lane.b32.xlu0 %v291_v17, %s1841_s6 }
0x1531   :  { %v1408_v24 = vpop.permute.xlu2 %1407 }
0x1532   :  { %v1410_v26 = vadd.f32 %v1408_v24, %v1400_v43 }
0x1534   :  { %1651 = vtanh.f32 %v1410_v26 }
0x153a   :  { %v1652_v25 = vpop.eup %1651 }
0x153b   :  { %1413 = vrot.lane.b32.xlu2 %v1652_v25, %s1843_s14 }
0x1550   :  { %v294_v27 = vpop.permute.xlu0 %293 }
0x1551   :  { %v295_v39 = vsel %vm292_vm12, %v282_v23, %v294_v27 }
0x1552   :  { %297 = vst.msk [vmem:[#allocation12] sm:$0xff] %vm296_vm2, %v295_v39 }
0x1553   :  { %1443 = dma.vmem_to_hbm [thread:$0]  %s1439_s1, 128, %s1441_s26, [#allocation13]  }
0x1595   :  { %v1414_v40 = vpop.permute.xlu2 %1413 }
0x1596   :  { %v1416_v42 = vmul.f32 %v1414_v40, %v1397_v35 }
0x1598   :  { %1418 = vrot.lane.b32.xlu1 %v1416_v42, %s1841_s6 }
0x160a   :  { %v1419_v28 = vpop.permute.xlu1 %1418 }
0x160b   :  { %1421 = vst.msk [vmem:[#allocation11] sm:$0xff] %vm296_vm2, %v1419_v28 }
0x160c   :  { %1432 = dma.vmem_to_hbm [thread:$0]  %s1428_s27, 128, %s1430_s29, [#allocation4]  }
0x160d   :  { %1829 = dma.done.wait [#allocation4], 128  }
0x160e   :  { %1830 = vsyncadd [#allocation4], 4294967168 }
0x160f   :  { %1831 = dma.done.wait [#allocation13], 128  }
0x1610   :  { %1832 = vsyncadd [#allocation13], 4294967168 }
0x1611   :  { %1452 = vsyncpa [#allocation3], 1 }
0x1612   :  { %1453 = vsyncpa [#allocation6], 1 }
0x1613   :  { %1454 = vsyncpa [#allocation9], 1 }
0x1614   :  { %1455 = vsyncpa [#allocation4], 1 }
0x1615   :  { %1456 = vsyncpa [#allocation13], 1 }

</bundles_post_ra>
